<compile_context>
chip_gen: v5e
topology: v5e:2x2
jax: 0.10.0
libtpu: 0.0.40
codegen_flags: <defaults>
</compile_context>

<pallas_src>
import math

import jax
import jax.numpy as jnp
from jax import lax
from jax.experimental import pallas as pl
from jax.experimental.pallas import tpu as pltpu

K = 4          # Conv1d kernel size in the module
EPS = 1e-5     # BatchNorm1d default eps
PREC = lax.Precision.HIGHEST


def cnnstack_forward(wpd, params):
    """wpd: (N, C, L) float32; params = (w1,b1,g1,be1,w2,b2,g2,be2,w3,b3)."""
    (w1, b1, g1, be1, w2, b2, g2, be2, w3, b3) = params
    n, c, l = wpd.shape
    l_final = l - 3 * (K - 1)
    rows = n * c

    # ---- parameter packing (wrapper / XLA side) -----------------------------
    eye_n = jnp.eye(n, dtype=jnp.float32)

    def prep_w(w):
        # (C_out, C_in, K) -> (K, N*C, N*C): block-diagonal weight per tap so one
        # 2-D matmul applies the conv tap to every batch element at once.
        taps = jnp.transpose(w, (2, 0, 1)).astype(jnp.float32)      # (K, C, C)
        return jax.vmap(lambda t: jnp.kron(eye_n, t))(taps)         # (K, N*C, N*C)

    def prep_v(v):
        # (C,) -> (N*C, 1): per-channel vector tiled over the batch groups.
        return jnp.tile(v.astype(jnp.float32).reshape(c, 1), (n, 1))

    wpack = jnp.concatenate([prep_w(w1), prep_w(w2), prep_w(w3)], axis=0)   # (3K, NC, NC)
    vpack = jnp.stack([prep_v(b1), prep_v(g1), prep_v(be1),
                       prep_v(b2), prep_v(g2), prep_v(be2),
                       prep_v(b3)], axis=0)                                  # (7, NC, 1)
    x_big = wpd.astype(jnp.float32).reshape(rows, l)                         # (N*C, L)

    # ---- kernel -------------------------------------------------------------
    def kernel(x_ref, w_ref, v_ref, o_ref):
        def conv_relu(x, layer, bias):
            l_in = x.shape[1]
            l_out = l_in - K + 1
            acc = jnp.dot(w_ref[layer * K], x[:, :l_out],
                          preferred_element_type=jnp.float32, precision=PREC)
            for k in range(1, K):          # K-1 more shifted-input MXU matmuls
                acc = acc + jnp.dot(w_ref[layer * K + k], x[:, k:k + l_out],
                                    preferred_element_type=jnp.float32,
                                    precision=PREC)
            return jnp.maximum(acc + bias, 0.0)

        def batchnorm(x, gamma, beta):
            # Training-mode BN over (batch, length) per channel; one fused reduction pass.
            l_cur = x.shape[1]
            inv_cnt = 1.0 / (n * l_cur)
            s = jnp.sum(x, axis=1, keepdims=True)          # (N*C, 1)
            ss = jnp.sum(x * x, axis=1, keepdims=True)     # (N*C, 1)
            s_c, ss_c = s[0:c], ss[0:c]
            for i in range(1, n):                          # fold batch groups (static)
                s_c = s_c + s[i * c:(i + 1) * c]
                ss_c = ss_c + ss[i * c:(i + 1) * c]
            m = s_c * inv_cnt
            var = ss_c * inv_cnt - m * m                   # biased variance (PyTorch BN)
            a = gamma[0:c] * lax.rsqrt(var + EPS)          # (C, 1)
            shift = beta[0:c] - a * m                      # (C, 1)
            a_big = jnp.concatenate([a] * n, axis=0)       # (N*C, 1)
            shift_big = jnp.concatenate([shift] * n, axis=0)
            return a_big * x + shift_big                   # single FMA per element

        h = x_ref[...]
        h = batchnorm(conv_relu(h, 0, v_ref[0]), v_ref[1], v_ref[2])
        h = batchnorm(conv_relu(h, 1, v_ref[3]), v_ref[4], v_ref[5])
        h = conv_relu(h, 2, v_ref[6])
        o_ref[...] = h.astype(o_ref.dtype)

    vmem = pl.BlockSpec(memory_space=pltpu.MemorySpace.VMEM)
    out = pl.pallas_call(
        kernel,
        out_shape=jax.ShapeDtypeStruct((rows, l_final), jnp.float32),
        in_specs=[vmem, vmem, vmem],
        out_specs=vmem,
    )(x_big, wpack, vpack)

    # nn.Flatten: rows of `out` are (n, c)-major, so a row-major reshape == flatten.
    return out.reshape(n, c * l_final)


def init_params(key, c):
    """Deterministic init mirroring the module's parameter shapes.

    Conv1d: PyTorch default uniform(-1/sqrt(C_in*K), 1/sqrt(C_in*K)) for w and b.
    BatchNorm1d: gamma = 1, beta = 0 (PyTorch default).
    """
    keys = jax.random.split(key, 6)
    bound = 1.0 / math.sqrt(c * K)

    def conv_init(kw, kb):
        w = jax.random.uniform(kw, (c, c, K), jnp.float32, -bound, bound)
        b = jax.random.uniform(kb, (c,), jnp.float32, -bound, bound)
        return w, b

    w1, b1 = conv_init(keys[0], keys[1])
    w2, b2 = conv_init(keys[2], keys[3])
    w3, b3 = conv_init(keys[4], keys[5])
    ones = jnp.ones((c,), jnp.float32)
    zeros = jnp.zeros((c,), jnp.float32)
    return (w1, b1, ones, zeros, w2, b2, ones, zeros, w3, b3)


def ref_forward(x, params):
    """Pure-JAX reference replicating the PyTorch forward (training-mode BN)."""
    (w1, b1, g1, be1, w2, b2, g2, be2, w3, b3) = params

    def conv_relu(x, w, b):
        l_out = x.shape[-1] - K + 1
        out = sum(jnp.einsum('oi,nil->nol', w[:, :, k], x[:, :, k:k + l_out],
                             precision=PREC) for k in range(K))
        return jnp.maximum(out + b[None, :, None], 0.0)

    def bn(x, g, be):
        m = jnp.mean(x, axis=(0, 2), keepdims=True)
        v = jnp.mean((x - m) ** 2, axis=(0, 2), keepdims=True)
        return g[None, :, None] * (x - m) * lax.rsqrt(v + EPS) + be[None, :, None]

    h = bn(conv_relu(x, w1, b1), g1, be1)
    h = bn(conv_relu(h, w2, b2), g2, be2)
    h = conv_relu(h, w3, b3)
    return h.reshape(h.shape[0], -1)


if __name__ == "__main__":
    key = jax.random.PRNGKey(0)
    k_x, k_p = jax.random.split(key)

    batch, channels, length = 2, 8, 32   # num_encoder_feature = 8
    wpd = jax.random.normal(k_x, (batch, channels, length), jnp.float32)
    params = init_params(k_p, channels)

    fwd = jax.jit(cnnstack_forward)
    out = jax.block_until_ready(fwd(wpd, params))

    expected_shape = (batch, channels * (length - 3 * (K - 1)))
    assert out.shape == expected_shape, (out.shape, expected_shape)

    ref = ref_forward(wpd, params)
    assert jnp.allclose(out, ref, atol=2e-3, rtol=2e-3), \
        float(jnp.max(jnp.abs(out - ref)))

    print("KERNEL_OK")
</pallas_src>

<mosaic_0001>
module attributes {stable_mosaic.version = 11 : i64} {
  func.func @kernel(%arg0: memref<16x32xf32, #tpu.memory_space<vmem>>, %arg1: memref<12x16x16xf32, #tpu.memory_space<vmem>>, %arg2: memref<7x16x1xf32, #tpu.memory_space<vmem>>, %arg3: memref<16x23xf32, #tpu.memory_space<vmem>>) attributes {dimension_semantics = [], scalar_prefetch = 0 : i64, scratch_operands = 0 : i64, tpu.core_type = #tpu.core_type<tc>} {
    %c0 = arith.constant 0 : index
    %c0_0 = arith.constant 0 : index
    %0 = vector.load %arg0[%c0, %c0_0] : memref<16x32xf32, #tpu.memory_space<vmem>>, vector<16x32xf32>
    %c0_1 = arith.constant 0 : index
    %c0_2 = arith.constant 0 : index
    %c0_3 = arith.constant 0 : index
    %1 = vector.load %arg2[%c0_1, %c0_2, %c0_3] : memref<7x16x1xf32, #tpu.memory_space<vmem>>, vector<1x16x1xf32>
    %2 = vector.shape_cast %1 : vector<1x16x1xf32> to vector<16x1xf32>
    %c0_4 = arith.constant 0 : index
    %c0_5 = arith.constant 0 : index
    %c0_6 = arith.constant 0 : index
    %3 = vector.load %arg1[%c0_4, %c0_5, %c0_6] : memref<12x16x16xf32, #tpu.memory_space<vmem>>, vector<1x16x16xf32>
    %4 = vector.shape_cast %3 : vector<1x16x16xf32> to vector<16x16xf32>
    %5 = vector.extract_strided_slice %0 {offsets = [0, 0], sizes = [16, 29], strides = [1, 1]} : vector<16x32xf32> to vector<16x29xf32>
    %cst = arith.constant dense<0.000000e+00> : vector<16x29xf32>
    %6 = tpu.matmul %4, %5, %cst {dimension_numbers = #tpu.dot_dimension_numbers<[1], [0], [0], [1], [0, 0, 1, 1], [], []>, precision = #tpu.contract_precision<fp32>} : vector<16x16xf32>, vector<16x29xf32>, vector<16x29xf32> -> vector<16x29xf32>
    %c1 = arith.constant 1 : index
    %c0_7 = arith.constant 0 : index
    %c0_8 = arith.constant 0 : index
    %7 = vector.load %arg1[%c1, %c0_7, %c0_8] : memref<12x16x16xf32, #tpu.memory_space<vmem>>, vector<1x16x16xf32>
    %8 = vector.shape_cast %7 : vector<1x16x16xf32> to vector<16x16xf32>
    %9 = vector.extract_strided_slice %0 {offsets = [0, 1], sizes = [16, 29], strides = [1, 1]} : vector<16x32xf32> to vector<16x29xf32>
    %cst_9 = arith.constant dense<0.000000e+00> : vector<16x29xf32>
    %10 = tpu.matmul %8, %9, %cst_9 {dimension_numbers = #tpu.dot_dimension_numbers<[1], [0], [0], [1], [0, 0, 1, 1], [], []>, precision = #tpu.contract_precision<fp32>} : vector<16x16xf32>, vector<16x29xf32>, vector<16x29xf32> -> vector<16x29xf32>
    %11 = arith.addf %6, %10 : vector<16x29xf32>
    %c2 = arith.constant 2 : index
    %c0_10 = arith.constant 0 : index
    %c0_11 = arith.constant 0 : index
    %12 = vector.load %arg1[%c2, %c0_10, %c0_11] : memref<12x16x16xf32, #tpu.memory_space<vmem>>, vector<1x16x16xf32>
    %13 = vector.shape_cast %12 : vector<1x16x16xf32> to vector<16x16xf32>
    %14 = vector.extract_strided_slice %0 {offsets = [0, 2], sizes = [16, 29], strides = [1, 1]} : vector<16x32xf32> to vector<16x29xf32>
    %cst_12 = arith.constant dense<0.000000e+00> : vector<16x29xf32>
    %15 = tpu.matmul %13, %14, %cst_12 {dimension_numbers = #tpu.dot_dimension_numbers<[1], [0], [0], [1], [0, 0, 1, 1], [], []>, precision = #tpu.contract_precision<fp32>} : vector<16x16xf32>, vector<16x29xf32>, vector<16x29xf32> -> vector<16x29xf32>
    %16 = arith.addf %11, %15 : vector<16x29xf32>
    %c3 = arith.constant 3 : index
    %c0_13 = arith.constant 0 : index
    %c0_14 = arith.constant 0 : index
    %17 = vector.load %arg1[%c3, %c0_13, %c0_14] : memref<12x16x16xf32, #tpu.memory_space<vmem>>, vector<1x16x16xf32>
    %18 = vector.shape_cast %17 : vector<1x16x16xf32> to vector<16x16xf32>
    %19 = vector.extract_strided_slice %0 {offsets = [0, 3], sizes = [16, 29], strides = [1, 1]} : vector<16x32xf32> to vector<16x29xf32>
    %cst_15 = arith.constant dense<0.000000e+00> : vector<16x29xf32>
    %20 = tpu.matmul %18, %19, %cst_15 {dimension_numbers = #tpu.dot_dimension_numbers<[1], [0], [0], [1], [0, 0, 1, 1], [], []>, precision = #tpu.contract_precision<fp32>} : vector<16x16xf32>, vector<16x29xf32>, vector<16x29xf32> -> vector<16x29xf32>
    %21 = arith.addf %16, %20 : vector<16x29xf32>
    %22 = vector.broadcast %2 : vector<16x1xf32> to vector<16x29xf32>
    %23 = arith.addf %21, %22 : vector<16x29xf32>
    %cst_16 = arith.constant 0.000000e+00 : f32
    %24 = vector.broadcast %cst_16 : f32 to vector<16x29xf32>
    %25 = arith.maximumf %23, %24 : vector<16x29xf32>
    %c1_17 = arith.constant 1 : index
    %c0_18 = arith.constant 0 : index
    %c0_19 = arith.constant 0 : index
    %26 = vector.load %arg2[%c1_17, %c0_18, %c0_19] : memref<7x16x1xf32, #tpu.memory_space<vmem>>, vector<1x16x1xf32>
    %27 = vector.shape_cast %26 : vector<1x16x1xf32> to vector<16x1xf32>
    %c2_20 = arith.constant 2 : index
    %c0_21 = arith.constant 0 : index
    %c0_22 = arith.constant 0 : index
    %28 = vector.load %arg2[%c2_20, %c0_21, %c0_22] : memref<7x16x1xf32, #tpu.memory_space<vmem>>, vector<1x16x1xf32>
    %29 = vector.shape_cast %28 : vector<1x16x1xf32> to vector<16x1xf32>
    %cst_23 = arith.constant dense<0.000000e+00> : vector<16xf32>
    %30 = vector.multi_reduction <add>, %25, %cst_23 [1] : vector<16x29xf32> to vector<16xf32>
    %31 = vector.shape_cast %30 : vector<16xf32> to vector<16x1xf32>
    %32 = arith.mulf %25, %25 : vector<16x29xf32>
    %cst_24 = arith.constant dense<0.000000e+00> : vector<16xf32>
    %33 = vector.multi_reduction <add>, %32, %cst_24 [1] : vector<16x29xf32> to vector<16xf32>
    %34 = vector.shape_cast %33 : vector<16xf32> to vector<16x1xf32>
    %35 = vector.extract_strided_slice %31 {offsets = [0, 0], sizes = [8, 1], strides = [1, 1]} : vector<16x1xf32> to vector<8x1xf32>
    %36 = vector.extract_strided_slice %34 {offsets = [0, 0], sizes = [8, 1], strides = [1, 1]} : vector<16x1xf32> to vector<8x1xf32>
    %37 = vector.extract_strided_slice %31 {offsets = [8, 0], sizes = [8, 1], strides = [1, 1]} : vector<16x1xf32> to vector<8x1xf32>
    %38 = arith.addf %35, %37 : vector<8x1xf32>
    %39 = vector.extract_strided_slice %34 {offsets = [8, 0], sizes = [8, 1], strides = [1, 1]} : vector<16x1xf32> to vector<8x1xf32>
    %40 = arith.addf %36, %39 : vector<8x1xf32>
    %cst_25 = arith.constant 0.0172413792 : f32
    %41 = vector.broadcast %cst_25 : f32 to vector<8x1xf32>
    %42 = arith.mulf %38, %41 : vector<8x1xf32>
    %cst_26 = arith.constant 0.0172413792 : f32
    %43 = vector.broadcast %cst_26 : f32 to vector<8x1xf32>
    %44 = arith.mulf %40, %43 : vector<8x1xf32>
    %45 = arith.mulf %42, %42 : vector<8x1xf32>
    %46 = arith.subf %44, %45 : vector<8x1xf32>
    %47 = vector.extract_strided_slice %27 {offsets = [0, 0], sizes = [8, 1], strides = [1, 1]} : vector<16x1xf32> to vector<8x1xf32>
    %cst_27 = arith.constant 9.99999974E-6 : f32
    %48 = vector.broadcast %cst_27 : f32 to vector<8x1xf32>
    %49 = arith.addf %46, %48 : vector<8x1xf32>
    %50 = math.rsqrt %49 : vector<8x1xf32>
    %51 = arith.mulf %47, %50 : vector<8x1xf32>
    %52 = vector.extract_strided_slice %29 {offsets = [0, 0], sizes = [8, 1], strides = [1, 1]} : vector<16x1xf32> to vector<8x1xf32>
    %53 = arith.mulf %51, %42 : vector<8x1xf32>
    %54 = arith.subf %52, %53 : vector<8x1xf32>
    %55 = tpu.concatenate %51, %51 in 0 : vector<8x1xf32>, vector<8x1xf32> -> vector<16x1xf32>
    %56 = tpu.concatenate %54, %54 in 0 : vector<8x1xf32>, vector<8x1xf32> -> vector<16x1xf32>
    %57 = vector.broadcast %55 : vector<16x1xf32> to vector<16x29xf32>
    %58 = arith.mulf %57, %25 : vector<16x29xf32>
    %59 = vector.broadcast %56 : vector<16x1xf32> to vector<16x29xf32>
    %60 = arith.addf %58, %59 : vector<16x29xf32>
    %c3_28 = arith.constant 3 : index
    %c0_29 = arith.constant 0 : index
    %c0_30 = arith.constant 0 : index
    %61 = vector.load %arg2[%c3_28, %c0_29, %c0_30] : memref<7x16x1xf32, #tpu.memory_space<vmem>>, vector<1x16x1xf32>
    %62 = vector.shape_cast %61 : vector<1x16x1xf32> to vector<16x1xf32>
    %c4 = arith.constant 4 : index
    %c0_31 = arith.constant 0 : index
    %c0_32 = arith.constant 0 : index
    %63 = vector.load %arg1[%c4, %c0_31, %c0_32] : memref<12x16x16xf32, #tpu.memory_space<vmem>>, vector<1x16x16xf32>
    %64 = vector.shape_cast %63 : vector<1x16x16xf32> to vector<16x16xf32>
    %65 = vector.extract_strided_slice %60 {offsets = [0, 0], sizes = [16, 26], strides = [1, 1]} : vector<16x29xf32> to vector<16x26xf32>
    %cst_33 = arith.constant dense<0.000000e+00> : vector<16x26xf32>
    %66 = tpu.matmul %64, %65, %cst_33 {dimension_numbers = #tpu.dot_dimension_numbers<[1], [0], [0], [1], [0, 0, 1, 1], [], []>, precision = #tpu.contract_precision<fp32>} : vector<16x16xf32>, vector<16x26xf32>, vector<16x26xf32> -> vector<16x26xf32>
    %c5 = arith.constant 5 : index
    %c0_34 = arith.constant 0 : index
    %c0_35 = arith.constant 0 : index
    %67 = vector.load %arg1[%c5, %c0_34, %c0_35] : memref<12x16x16xf32, #tpu.memory_space<vmem>>, vector<1x16x16xf32>
    %68 = vector.shape_cast %67 : vector<1x16x16xf32> to vector<16x16xf32>
    %69 = vector.extract_strided_slice %60 {offsets = [0, 1], sizes = [16, 26], strides = [1, 1]} : vector<16x29xf32> to vector<16x26xf32>
    %cst_36 = arith.constant dense<0.000000e+00> : vector<16x26xf32>
    %70 = tpu.matmul %68, %69, %cst_36 {dimension_numbers = #tpu.dot_dimension_numbers<[1], [0], [0], [1], [0, 0, 1, 1], [], []>, precision = #tpu.contract_precision<fp32>} : vector<16x16xf32>, vector<16x26xf32>, vector<16x26xf32> -> vector<16x26xf32>
    %71 = arith.addf %66, %70 : vector<16x26xf32>
    %c6 = arith.constant 6 : index
    %c0_37 = arith.constant 0 : index
    %c0_38 = arith.constant 0 : index
    %72 = vector.load %arg1[%c6, %c0_37, %c0_38] : memref<12x16x16xf32, #tpu.memory_space<vmem>>, vector<1x16x16xf32>
    %73 = vector.shape_cast %72 : vector<1x16x16xf32> to vector<16x16xf32>
    %74 = vector.extract_strided_slice %60 {offsets = [0, 2], sizes = [16, 26], strides = [1, 1]} : vector<16x29xf32> to vector<16x26xf32>
    %cst_39 = arith.constant dense<0.000000e+00> : vector<16x26xf32>
    %75 = tpu.matmul %73, %74, %cst_39 {dimension_numbers = #tpu.dot_dimension_numbers<[1], [0], [0], [1], [0, 0, 1, 1], [], []>, precision = #tpu.contract_precision<fp32>} : vector<16x16xf32>, vector<16x26xf32>, vector<16x26xf32> -> vector<16x26xf32>
    %76 = arith.addf %71, %75 : vector<16x26xf32>
    %c7 = arith.constant 7 : index
    %c0_40 = arith.constant 0 : index
    %c0_41 = arith.constant 0 : index
    %77 = vector.load %arg1[%c7, %c0_40, %c0_41] : memref<12x16x16xf32, #tpu.memory_space<vmem>>, vector<1x16x16xf32>
    %78 = vector.shape_cast %77 : vector<1x16x16xf32> to vector<16x16xf32>
    %79 = vector.extract_strided_slice %60 {offsets = [0, 3], sizes = [16, 26], strides = [1, 1]} : vector<16x29xf32> to vector<16x26xf32>
    %cst_42 = arith.constant dense<0.000000e+00> : vector<16x26xf32>
    %80 = tpu.matmul %78, %79, %cst_42 {dimension_numbers = #tpu.dot_dimension_numbers<[1], [0], [0], [1], [0, 0, 1, 1], [], []>, precision = #tpu.contract_precision<fp32>} : vector<16x16xf32>, vector<16x26xf32>, vector<16x26xf32> -> vector<16x26xf32>
    %81 = arith.addf %76, %80 : vector<16x26xf32>
    %82 = vector.broadcast %62 : vector<16x1xf32> to vector<16x26xf32>
    %83 = arith.addf %81, %82 : vector<16x26xf32>
    %cst_43 = arith.constant 0.000000e+00 : f32
    %84 = vector.broadcast %cst_43 : f32 to vector<16x26xf32>
    %85 = arith.maximumf %83, %84 : vector<16x26xf32>
    %c4_44 = arith.constant 4 : index
    %c0_45 = arith.constant 0 : index
    %c0_46 = arith.constant 0 : index
    %86 = vector.load %arg2[%c4_44, %c0_45, %c0_46] : memref<7x16x1xf32, #tpu.memory_space<vmem>>, vector<1x16x1xf32>
    %87 = vector.shape_cast %86 : vector<1x16x1xf32> to vector<16x1xf32>
    %c5_47 = arith.constant 5 : index
    %c0_48 = arith.constant 0 : index
    %c0_49 = arith.constant 0 : index
    %88 = vector.load %arg2[%c5_47, %c0_48, %c0_49] : memref<7x16x1xf32, #tpu.memory_space<vmem>>, vector<1x16x1xf32>
    %89 = vector.shape_cast %88 : vector<1x16x1xf32> to vector<16x1xf32>
    %cst_50 = arith.constant dense<0.000000e+00> : vector<16xf32>
    %90 = vector.multi_reduction <add>, %85, %cst_50 [1] : vector<16x26xf32> to vector<16xf32>
    %91 = vector.shape_cast %90 : vector<16xf32> to vector<16x1xf32>
    %92 = arith.mulf %85, %85 : vector<16x26xf32>
    %cst_51 = arith.constant dense<0.000000e+00> : vector<16xf32>
    %93 = vector.multi_reduction <add>, %92, %cst_51 [1] : vector<16x26xf32> to vector<16xf32>
    %94 = vector.shape_cast %93 : vector<16xf32> to vector<16x1xf32>
    %95 = vector.extract_strided_slice %91 {offsets = [0, 0], sizes = [8, 1], strides = [1, 1]} : vector<16x1xf32> to vector<8x1xf32>
    %96 = vector.extract_strided_slice %94 {offsets = [0, 0], sizes = [8, 1], strides = [1, 1]} : vector<16x1xf32> to vector<8x1xf32>
    %97 = vector.extract_strided_slice %91 {offsets = [8, 0], sizes = [8, 1], strides = [1, 1]} : vector<16x1xf32> to vector<8x1xf32>
    %98 = arith.addf %95, %97 : vector<8x1xf32>
    %99 = vector.extract_strided_slice %94 {offsets = [8, 0], sizes = [8, 1], strides = [1, 1]} : vector<16x1xf32> to vector<8x1xf32>
    %100 = arith.addf %96, %99 : vector<8x1xf32>
    %cst_52 = arith.constant 0.0192307699 : f32
    %101 = vector.broadcast %cst_52 : f32 to vector<8x1xf32>
    %102 = arith.mulf %98, %101 : vector<8x1xf32>
    %cst_53 = arith.constant 0.0192307699 : f32
    %103 = vector.broadcast %cst_53 : f32 to vector<8x1xf32>
    %104 = arith.mulf %100, %103 : vector<8x1xf32>
    %105 = arith.mulf %102, %102 : vector<8x1xf32>
    %106 = arith.subf %104, %105 : vector<8x1xf32>
    %107 = vector.extract_strided_slice %87 {offsets = [0, 0], sizes = [8, 1], strides = [1, 1]} : vector<16x1xf32> to vector<8x1xf32>
    %cst_54 = arith.constant 9.99999974E-6 : f32
    %108 = vector.broadcast %cst_54 : f32 to vector<8x1xf32>
    %109 = arith.addf %106, %108 : vector<8x1xf32>
    %110 = math.rsqrt %109 : vector<8x1xf32>
    %111 = arith.mulf %107, %110 : vector<8x1xf32>
    %112 = vector.extract_strided_slice %89 {offsets = [0, 0], sizes = [8, 1], strides = [1, 1]} : vector<16x1xf32> to vector<8x1xf32>
    %113 = arith.mulf %111, %102 : vector<8x1xf32>
    %114 = arith.subf %112, %113 : vector<8x1xf32>
    %115 = tpu.concatenate %111, %111 in 0 : vector<8x1xf32>, vector<8x1xf32> -> vector<16x1xf32>
    %116 = tpu.concatenate %114, %114 in 0 : vector<8x1xf32>, vector<8x1xf32> -> vector<16x1xf32>
    %117 = vector.broadcast %115 : vector<16x1xf32> to vector<16x26xf32>
    %118 = arith.mulf %117, %85 : vector<16x26xf32>
    %119 = vector.broadcast %116 : vector<16x1xf32> to vector<16x26xf32>
    %120 = arith.addf %118, %119 : vector<16x26xf32>
    %c6_55 = arith.constant 6 : index
    %c0_56 = arith.constant 0 : index
    %c0_57 = arith.constant 0 : index
    %121 = vector.load %arg2[%c6_55, %c0_56, %c0_57] : memref<7x16x1xf32, #tpu.memory_space<vmem>>, vector<1x16x1xf32>
    %122 = vector.shape_cast %121 : vector<1x16x1xf32> to vector<16x1xf32>
    %c8 = arith.constant 8 : index
    %c0_58 = arith.constant 0 : index
    %c0_59 = arith.constant 0 : index
    %123 = vector.load %arg1[%c8, %c0_58, %c0_59] : memref<12x16x16xf32, #tpu.memory_space<vmem>>, vector<1x16x16xf32>
    %124 = vector.shape_cast %123 : vector<1x16x16xf32> to vector<16x16xf32>
    %125 = vector.extract_strided_slice %120 {offsets = [0, 0], sizes = [16, 23], strides = [1, 1]} : vector<16x26xf32> to vector<16x23xf32>
    %cst_60 = arith.constant dense<0.000000e+00> : vector<16x23xf32>
    %126 = tpu.matmul %124, %125, %cst_60 {dimension_numbers = #tpu.dot_dimension_numbers<[1], [0], [0], [1], [0, 0, 1, 1], [], []>, precision = #tpu.contract_precision<fp32>} : vector<16x16xf32>, vector<16x23xf32>, vector<16x23xf32> -> vector<16x23xf32>
    %c9 = arith.constant 9 : index
    %c0_61 = arith.constant 0 : index
    %c0_62 = arith.constant 0 : index
    %127 = vector.load %arg1[%c9, %c0_61, %c0_62] : memref<12x16x16xf32, #tpu.memory_space<vmem>>, vector<1x16x16xf32>
    %128 = vector.shape_cast %127 : vector<1x16x16xf32> to vector<16x16xf32>
    %129 = vector.extract_strided_slice %120 {offsets = [0, 1], sizes = [16, 23], strides = [1, 1]} : vector<16x26xf32> to vector<16x23xf32>
    %cst_63 = arith.constant dense<0.000000e+00> : vector<16x23xf32>
    %130 = tpu.matmul %128, %129, %cst_63 {dimension_numbers = #tpu.dot_dimension_numbers<[1], [0], [0], [1], [0, 0, 1, 1], [], []>, precision = #tpu.contract_precision<fp32>} : vector<16x16xf32>, vector<16x23xf32>, vector<16x23xf32> -> vector<16x23xf32>
    %131 = arith.addf %126, %130 : vector<16x23xf32>
    %c10 = arith.constant 10 : index
    %c0_64 = arith.constant 0 : index
    %c0_65 = arith.constant 0 : index
    %132 = vector.load %arg1[%c10, %c0_64, %c0_65] : memref<12x16x16xf32, #tpu.memory_space<vmem>>, vector<1x16x16xf32>
    %133 = vector.shape_cast %132 : vector<1x16x16xf32> to vector<16x16xf32>
    %134 = vector.extract_strided_slice %120 {offsets = [0, 2], sizes = [16, 23], strides = [1, 1]} : vector<16x26xf32> to vector<16x23xf32>
    %cst_66 = arith.constant dense<0.000000e+00> : vector<16x23xf32>
    %135 = tpu.matmul %133, %134, %cst_66 {dimension_numbers = #tpu.dot_dimension_numbers<[1], [0], [0], [1], [0, 0, 1, 1], [], []>, precision = #tpu.contract_precision<fp32>} : vector<16x16xf32>, vector<16x23xf32>, vector<16x23xf32> -> vector<16x23xf32>
    %136 = arith.addf %131, %135 : vector<16x23xf32>
    %c11 = arith.constant 11 : index
    %c0_67 = arith.constant 0 : index
    %c0_68 = arith.constant 0 : index
    %137 = vector.load %arg1[%c11, %c0_67, %c0_68] : memref<12x16x16xf32, #tpu.memory_space<vmem>>, vector<1x16x16xf32>
    %138 = vector.shape_cast %137 : vector<1x16x16xf32> to vector<16x16xf32>
    %139 = vector.extract_strided_slice %120 {offsets = [0, 3], sizes = [16, 23], strides = [1, 1]} : vector<16x26xf32> to vector<16x23xf32>
    %cst_69 = arith.constant dense<0.000000e+00> : vector<16x23xf32>
    %140 = tpu.matmul %138, %139, %cst_69 {dimension_numbers = #tpu.dot_dimension_numbers<[1], [0], [0], [1], [0, 0, 1, 1], [], []>, precision = #tpu.contract_precision<fp32>} : vector<16x16xf32>, vector<16x23xf32>, vector<16x23xf32> -> vector<16x23xf32>
    %141 = arith.addf %136, %140 : vector<16x23xf32>
    %142 = vector.broadcast %122 : vector<16x1xf32> to vector<16x23xf32>
    %143 = arith.addf %141, %142 : vector<16x23xf32>
    %cst_70 = arith.constant 0.000000e+00 : f32
    %144 = vector.broadcast %cst_70 : f32 to vector<16x23xf32>
    %145 = arith.maximumf %143, %144 : vector<16x23xf32>
    %c0_71 = arith.constant 0 : index
    %c0_72 = arith.constant 0 : index
    %146 = vector.load %arg3[%c0_71, %c0_72] : memref<16x23xf32, #tpu.memory_space<vmem>>, vector<16x23xf32>
    tpu.vector_store %arg3[%c0_71, %c0_72], %145 {strides = array<i32>} : memref<16x23xf32, #tpu.memory_space<vmem>>, vector<16x23xf32>,
    return
  }
}

</mosaic_0001>

<bundles_post_ra>
// kernel: cnnstack_forward.1
= control target key start
LH: loop header
LB: loop body
LE: loop exit
PB: predicated region body
PF: predicated region fallthrough
CT: control target
= control target key end

     0   :  { %s2680_s14 = smov 127   ;;  %s2681_s15 = smov 126   ;;  %vm31_vm0 = vcmask 130048   ;;  %vm856_vm1 = vcmask 236544   ;;  %vm1746_vm5 = vcmask 211968   ;;  %vm2632_vm9 = vcmask 187392   ;;  %s3145_s0 = inlined_call_operand.vmem [shape: f32[16,32], index: 0, kind: input, shape index: {}]   ;;  %s3146_s1 = inlined_call_operand.vmem [shape: f32[12,16,16], index: 1, kind: input, shape index: {}]   ;;  %s3147_s2 = inlined_call_operand.vmem [shape: f32[7,16,1], index: 2, kind: input, shape index: {}]   ;;  %s3148_s3 = inlined_call_operand.vmem [shape: f32[16,23], index: 3, kind: output, shape index: {}]  }
   0x1   :  { %v15_v0 = vld [vmem:[%s3145_s0 + $0x8] sm:$0xff]  ;;  %s2682_s16 = smov 125   ;;  %v14_v1 = vld [vmem:[%s3145_s0] sm:$0xff]  ;;  %v2639_v2 = vld [vmem:[%s3146_s1 + $0x10] sm:$0xff] }
   0x2   :  { %27 = vrot.lane.b32.xlu0 %v15_v0, %s2680_s14  ;;  %429 = vrot.lane.b32.xlu1 %v15_v0, %s2681_s15  ;;  %v33_v3 = vsel %vm31_vm0, %v2639_v2, 0  ;;  %v2640_v5 = vld [vmem:[%s3146_s1 + $0x18] sm:$0xff]  ;;  %v2726_v7 = vand.u32 4294901760, %v15_v0  ;;  %v2729_v9 = vand.u32 4294901760, %v14_v1  ;;  %v18_v20 = vld [vmem:[%s3146_s1] sm:$0xff] }
   0x3   :  { %636 = vrot.lane.b32.xlu2 %v15_v0, %s2682_s16  ;;  %v2720_v4 = vand.u32 4294901760, %v33_v3  ;;  %v36_v8 = vsel %vm31_vm0, %v2640_v5, 0  ;;  %v229_v25 = vsel %vm31_vm0, %v18_v20, 0  ;;  %v19_v37 = vld [vmem:[%s3146_s1 + $0x8] sm:$0xff] }
   0x4   :  { %v2731_v12 = vand.u32 4294901760, %v36_v8  ;;  %v284_v13 = vsub.f32 %v15_v0, %v2726_v7  ;;  %v2735_v15 = vsub.f32 %v14_v1, %v2729_v9  ;;  %v2744_v33 = vand.u32 4294901760, %v229_v25 }
   0x5   :  { %v57_v6 = vsub.f32 %v33_v3, %v2720_v4  ;;  %v232_v42 = vsel %vm31_vm0, %v19_v37, 0 }
   0x6   :  { %v65_v18 = vsub.f32 %v36_v8, %v2731_v12  ;;  %v285_v19 = vand.u32 4294901760, %v284_v13  ;;  %v291_v22 = vand.u32 4294901760, %v2735_v15  ;;  %v2750_v40 = vsub.f32 %v229_v25, %v2744_v33 }
   0x7   :  { %v58_v11 = vand.u32 4294901760, %v57_v6  ;;  %v2758_v49 = vand.u32 4294901760, %v232_v42 }
   0x8   :  { %v66_v28 = vand.u32 4294901760, %v65_v18  ;;  %v286_v29 = vsub.f32 %v284_v13, %v285_v19  ;;  %v292_v32 = vsub.f32 %v2735_v15, %v291_v22  ;;  %v254_v48 = vand.u32 4294901760, %v2750_v40 }
   0x9   :  { %v59_v17 = vsub.f32 %v57_v6, %v58_v11  ;;  %v2770_v53 = vsub.f32 %v232_v42, %v2758_v49 }
   0xa   :  { %25 = vrot.lane.b32.xlu0 %v14_v1, %s2680_s14  ;;  %427 = vrot.lane.b32.xlu1 %v14_v1, %s2681_s15  ;;  %v67_v35 = vsub.f32 %v65_v18, %v66_v28  ;;  %v287_v36 = vand.u32 4294901760, %v286_v29  ;;  %v293_v39 = vand.u32 4294901760, %v292_v32  ;;  %v255_v52 = vsub.f32 %v2750_v40, %v254_v48 }
   0xb   :  { %634 = vrot.lane.b32.xlu2 %v14_v1, %s2682_s16  ;;  %v60_v27 = vand.u32 4294901760, %v59_v17  ;;  %v262_v57 = vand.u32 4294901760, %v2770_v53 }
   0xc   :  { %v68_v43 = vand.u32 4294901760, %v67_v35  ;;  %v256_v56 = vand.u32 4294901760, %v255_v52 }
   0xd   :  { %v263_v63 = vsub.f32 %v2770_v53, %v262_v57 }
   0xf   :  { %v264_v5 = vand.u32 4294901760, %v263_v63 }
  0x5d   :  { %v637_v45 = vpop.permute.xlu2 %636 }
  0x5e   :  { %v2777_v60 = vand.u32 4294901760, %v637_v45 }
  0x60   :  { %v2789_v0 = vsub.f32 %v637_v45, %v2777_v60 }
  0x65   :  { %v635_v58 = vpop.permute.xlu2 %634 }
  0x66   :  { %v2782_v62 = vand.u32 4294901760, %v635_v58 }
  0x68   :  { %v702_v3 = vsub.f32 %v635_v58, %v2782_v62 }
  0x74   :  { %v28_v10 = vpop.permute.xlu0 %27  ;;  %v430_v23 = vpop.permute.xlu1 %429 }
  0x75   :  { %v52_v14 = vand.u32 4294901760, %v28_v10  ;;  %v2755_v47 = vand.u32 4294901760, %v430_v23 }
  0x77   :  { %v88_v16 = vsub.f32 %v28_v10, %v52_v14  ;;  %53 = vmatpush.msra.mxu0 %v52_v14  ;;  %154 = vmatpush.msra.mxu3 %v52_v14  ;;  %v489_v51 = vsub.f32 %v430_v23, %v2755_v47 }
  0x79   :  { %124 = vmatpush.msra.mxu2 %v88_v16  ;;  %v89_v21 = vand.u32 4294901760, %v88_v16  ;;  %v490_v55 = vand.u32 4294901760, %v489_v51 }
  0x7b   :  { %v90_v24 = vsub.f32 %v88_v16, %v89_v21  ;;  %v491_v61 = vsub.f32 %v489_v51, %v490_v55 }
  0x7c   :  { %v26_v26 = vpop.permute.xlu0 %25  ;;  %v428_v44 = vpop.permute.xlu1 %427 }
  0x7d   :  { %v54_v30 = vand.u32 4294901760, %v26_v26  ;;  %v91_v31 = vand.u32 4294901760, %v90_v24  ;;  %v2761_v50 = vand.u32 4294901760, %v428_v44  ;;  %v492_v2 = vand.u32 4294901760, %v491_v61 }
  0x7f   :  { %v94_v34 = vsub.f32 %v26_v26, %v54_v30  ;;  %55 = vmatpush.msra.mxu0 %v54_v30  ;;  %92 = vmatpush.msra.mxu1 %v91_v31  ;;  %v495_v54 = vsub.f32 %v428_v44, %v2761_v50 }
  0x80   :  { %156 = vmatpush.msra.mxu3 %v54_v30  ;;  %61 = vmatmul.f32.vlgmr.msra.gmra.mxu0 %v60_v27 }
  0x81   :  { %187 = vmatpush.msrb.mxu0 %v89_v21  ;;  %127 = vmatpush.msra.mxu2 %v94_v34  ;;  %v95_v38 = vand.u32 4294901760, %v94_v34  ;;  %v496_v59 = vand.u32 4294901760, %v495_v54 }
  0x82   :  { %130 = vmatmul.f32.vlgmr.msra.gmra.mxu2 %v57_v6  ;;  %160 = vmatmul.f32.vlgmr.msra.gmra.mxu3 %v58_v11  ;;  %v2641_v6 = vld [vmem:[%s3146_s1 + $0x20] sm:$0xff] }
  0x83   :  { %191 = vmatpush.msrb.mxu0 %v95_v38  ;;  %v96_v41 = vsub.f32 %v94_v34, %v95_v38  ;;  %249 = vmatpush.msrb.mxu2 %v2726_v7  ;;  %v497_v1 = vsub.f32 %v495_v54, %v496_v59  ;;  %v434_v10 = vsel %vm31_vm0, %v2641_v6, 0  ;;  %v16_v38 = vld [vmem:[%s3147_s2] sm:$0xff] }
  0x84   :  { %288 = vmatpush.msrb.mxu3 %v287_v36 }
  0x85   :  { %320 = vmatpush.msra.mxu0 %v284_v13  ;;  %v97_v46 = vand.u32 4294901760, %v96_v41  ;;  %251 = vmatpush.msrb.mxu2 %v2729_v9  ;;  %v498_v8 = vand.u32 4294901760, %v497_v1  ;;  %v2804_v13 = vand.u32 4294901760, %v434_v10 }
  0x86   :  { %294 = vmatpush.msrb.mxu3 %v293_v39  ;;  %v17_v39 = vld [vmem:[%s3147_s2 + $0x8] sm:$0xff] }
  0x87   :  { %323 = vmatpush.msra.mxu0 %v2735_v15  ;;  %98 = vmatpush.msra.mxu1 %v97_v46  ;;  %v2642_v15 = vld [vmem:[%s3146_s1 + $0x28] sm:$0xff] }
  0x88   :  { %383 = vmatpush.msra.mxu2 %v285_v19  ;;  %69 = vmatmul.f32.gmra.mxu0 %v68_v43 }
  0x89   :  { %100 = vmatmul.f32.vlgmr.msra.gmra.mxu1 %v2720_v4  ;;  %412 = vmatpush.msra.mxu3 %v2726_v7 }
  0x8a   :  { %216 = vmatpush.msrb.mxu1 %v52_v14  ;;  %135 = vmatmul.f32.gmra.mxu2 %v65_v18  ;;  %v437_v18 = vsel %vm31_vm0, %v2642_v15, 0 }
  0x8b   :  { %166 = vmatmul.f32.gmra.mxu3 %v66_v28  ;;  %387 = vmatpush.msra.mxu2 %v291_v22  ;;  %v465_v20 = vand.u32 4294901760, %v437_v18  ;;  %v2643_v22 = vld [vmem:[%s3146_s1 + $0x30] sm:$0xff]  ;;  %v2644_v28 = vld [vmem:[%s3146_s1 + $0x38] sm:$0xff] }
  0x8c   :  { %218 = vmatpush.msrb.mxu1 %v54_v30  ;;  %414 = vmatpush.msra.mxu3 %v2729_v9  ;;  %v641_v23 = vsel %vm31_vm0, %v2643_v22, 0  ;;  %v644_v30 = vsel %vm31_vm0, %v2644_v28, 0 }
  0x8d   :  { %v466_v21 = vsub.f32 %v437_v18, %v465_v20  ;;  %v664_v26 = vand.u32 4294901760, %v641_v23 }
  0x8e   :  { %350 = vmatpush.msra.mxu1 %v2726_v7  ;;  %v697_v7 = vand.u32 4294901760, %v2789_v0 }
  0x8f   :  { %v467_v25 = vand.u32 4294901760, %v466_v21  ;;  %v665_v29 = vsub.f32 %v641_v23, %v664_v26 }
  0x90   :  { %352 = vmatpush.msra.mxu1 %v2729_v9  ;;  %193 = vmatmul.f32.vlgmr.msrb.gmra.mxu0 %v2720_v4  ;;  %v703_v9 = vand.u32 4294901760, %v702_v3  ;;  %v698_v11 = vsub.f32 %v2789_v0, %v697_v7 }
  0x91   :  { %104 = vmatmul.f32.gmra.mxu1 %v2731_v12  ;;  %454 = vmatpush.msrb.mxu0 %v2755_v47  ;;  %v468_v27 = vsub.f32 %v466_v21, %v467_v25  ;;  %v666_v32 = vand.u32 4294901760, %v665_v29 }
  0x92   :  { %257 = vmatmul.f32.vlgmr.msrb.gmra.mxu2 %v256_v56  ;;  %v704_v14 = vsub.f32 %v702_v3, %v703_v9  ;;  %v699_v16 = vand.u32 4294901760, %v698_v11 }
  0x93   :  { %296 = vmatmul.f32.vlgmr.msrb.gmra.mxu3 %v2744_v33  ;;  %525 = vmatpush.msrb.mxu2 %v489_v51  ;;  %v469_v31 = vand.u32 4294901760, %v468_v27  ;;  %v667_v34 = vsub.f32 %v665_v29, %v666_v32 }
  0x94   :  { %555 = vmatpush.msrb.mxu3 %v2755_v47  ;;  %456 = vmatpush.msrb.mxu0 %v2761_v50  ;;  %v705_v17 = vand.u32 4294901760, %v704_v14 }
  0x95   :  { %528 = vmatpush.msrb.mxu2 %v495_v54  ;;  %v668_v36 = vand.u32 4294901760, %v667_v34 }
  0x96   :  { %557 = vmatpush.msrb.mxu3 %v2761_v50 }
  0x98   :  { %197 = vmatmul.f32.gmra.mxu0 %v2731_v12 }
  0x99   :  { %220 = vmatmul.f32.vlgmr.msrb.gmra.mxu1 %v2720_v4  ;;  %v458_v4 = vsub.f32 %v434_v10, %v2804_v13 }
  0x9a   :  { %493 = vmatpush.msrb.mxu1 %v492_v2  ;;  %265 = vmatmul.f32.gmra.mxu2 %v264_v5 }
  0x9b   :  { %300 = vmatmul.f32.gmra.mxu3 %v2758_v49  ;;  %v459_v19 = vand.u32 4294901760, %v458_v4 }
  0x9c   :  { %499 = vmatpush.msrb.mxu1 %v498_v8 }
  0xa0   :  { %326 = vmatmul.f32.vlgmr.msra.gmra.mxu0 %v2750_v40  ;;  %v2683_v40 = vmov 0  }
  0xa1   :  { %224 = vmatmul.f32.gmra.mxu1 %v2731_v12  ;;  %588 = vmatpush.msra.mxu0 %v490_v55  ;;  %v460_v12 = vsub.f32 %v458_v4, %v459_v19 }
  0xa2   :  { %389 = vmatmul.f32.vlgmr.msra.gmra.mxu2 %v2744_v33  ;;  %2673 = vset.pattern.permute.xlu0 %v2683_v40 }
  0xa3   :  { %416 = vmatmul.f32.vlgmr.msra.gmra.mxu3 %v2744_v33  ;;  %592 = vmatpush.msra.mxu0 %v496_v59  ;;  %v461_v24 = vand.u32 4294901760, %v460_v12  ;;  %v672_v33 = vand.u32 4294901760, %v644_v30 }
  0xa4   :  { %700 = vmatpush.msra.mxu3 %v699_v16  ;;  %661 = vmatpush.msra.mxu2 %v2777_v60 }
  0xa5   :  { %v673_v35 = vsub.f32 %v644_v30, %v672_v33  ;;  %2674 = vset.pattern.permute.xlu1 %v2683_v40  ;;  %840 = vperm.xlu0 %2673, %v16_v38  }
  0xa6   :  { %706 = vmatpush.msra.mxu3 %v705_v17  ;;  %663 = vmatpush.msra.mxu2 %v2782_v62 }
  0xa7   :  { %v674_v37 = vand.u32 4294901760, %v673_v35  ;;  %845 = vperm.xlu1 %2674, %v17_v39   ;;  %2675 = vset.pattern.permute.xlu2 %v2683_v40 }
  0xa8   :  { %331 = vmatmul.f32.gmra.mxu0 %v2770_v53 }
  0xa9   :  { %356 = vmatmul.f32.vlgmr.msra.gmra.mxu1 %v254_v48  ;;  %v675_v41 = vsub.f32 %v673_v35, %v674_v37 }
  0xaa   :  { %617 = vmatpush.msra.mxu1 %v2755_v47  ;;  %393 = vmatmul.f32.gmra.mxu2 %v2758_v49 }
  0xab   :  { %420 = vmatmul.f32.gmra.mxu3 %v2758_v49  ;;  %v676_v42 = vand.u32 4294901760, %v675_v41 }
  0xac   :  { %619 = vmatpush.msra.mxu1 %v2761_v50 }
  0xb0   :  { %462 = vmatmul.f32.vlgmr.msrb.gmra.mxu0 %v461_v24 }
  0xb1   :  { %362 = vmatmul.f32.gmra.mxu1 %v262_v57  ;;  %732 = vmatpush.msrb.mxu0 %v2789_v0 }
  0xb2   :  { %531 = vmatmul.f32.vlgmr.msrb.gmra.mxu2 %v458_v4 }
  0xb3   :  { %561 = vmatmul.f32.vlgmr.msrb.gmra.mxu3 %v459_v19  ;;  %795 = vmatpush.msrb.mxu2 %v697_v7 }
  0xb4   :  { %824 = vmatpush.msrb.mxu3 %v2777_v60  ;;  %735 = vmatpush.msrb.mxu0 %v702_v3 }
  0xb5   :  { %799 = vmatpush.msrb.mxu2 %v703_v9 }
  0xb6   :  { %826 = vmatpush.msrb.mxu3 %v2782_v62 }
  0xb8   :  { %470 = vmatmul.f32.gmra.mxu0 %v469_v31 }
  0xb9   :  { %501 = vmatmul.f32.vlgmr.msrb.gmra.mxu1 %v2804_v13 }
  0xba   :  { %762 = vmatpush.msrb.mxu1 %v2777_v60  ;;  %536 = vmatmul.f32.gmra.mxu2 %v466_v21 }
  0xbb   :  { %567 = vmatmul.f32.gmra.mxu3 %v467_v25 }
  0xbc   :  { %764 = vmatpush.msrb.mxu1 %v2782_v62 }
  0xc0   :  { %594 = vmatmul.f32.vlgmr.msra.gmra.mxu0 %v2804_v13 }
  0xc1   :  { %505 = vmatmul.f32.gmra.mxu1 %v465_v20 }
  0xc2   :  { %669 = vmatmul.f32.vlgmr.msra.gmra.mxu2 %v668_v36 }
  0xc3   :  { %708 = vmatmul.f32.vlgmr.msra.gmra.mxu3 %v664_v26 }
  0xc8   :  { %598 = vmatmul.f32.gmra.mxu0 %v465_v20 }
  0xc9   :  { %621 = vmatmul.f32.vlgmr.msra.gmra.mxu1 %v2804_v13 }
  0xca   :  { %677 = vmatmul.f32.gmra.mxu2 %v676_v42 }
  0xcb   :  { %712 = vmatmul.f32.gmra.mxu3 %v672_v33 }
  0xd0   :  { %738 = vmatmul.f32.vlgmr.msrb.gmra.mxu0 %v665_v29 }
  0xd1   :  { %625 = vmatmul.f32.gmra.mxu1 %v465_v20 }
  0xd2   :  { %801 = vmatmul.f32.vlgmr.msrb.gmra.mxu2 %v664_v26 }
  0xd3   :  { %828 = vmatmul.f32.vlgmr.msrb.gmra.mxu3 %v664_v26 }
  0xd8   :  { %743 = vmatmul.f32.gmra.mxu0 %v673_v35 }
  0xd9   :  { %768 = vmatmul.f32.vlgmr.msrb.gmra.mxu1 %v666_v32 }
  0xda   :  { %805 = vmatmul.f32.gmra.mxu2 %v672_v33 }
  0xdb   :  { %832 = vmatmul.f32.gmra.mxu3 %v672_v33 }
  0xe1   :  { %774 = vmatmul.f32.gmra.mxu1 %v674_v37 }
  0xfd   :  { %v62_v43 = vpop.f32.mrf.mxu0 }
 0x105   :  { %v70_v44 = vpop.f32.mrf.mxu0  ;;  %v131_v46 = vpop.f32.mrf.mxu2 }
 0x106   :  { %v101_v45 = vpop.f32.mrf.mxu1  ;;  %v161_v47 = vpop.f32.mrf.mxu3 }
 0x107   :  { %v102_v9 = vadd.f32 %v101_v45, %v62_v43 }
 0x109   :  { %v132_v10 = vadd.f32 %v131_v46, %v102_v9 }
 0x10b   :  { %v162_v16 = vadd.f32 %v161_v47, %v132_v10 }
 0x10d   :  { %v194_v49 = vpop.f32.mrf.mxu0  ;;  %v136_v50 = vpop.f32.mrf.mxu2 }
 0x10e   :  { %v105_v48 = vpop.f32.mrf.mxu1  ;;  %v167_v51 = vpop.f32.mrf.mxu3  ;;  %v195_v17 = vadd.f32 %v194_v49, %v162_v16 }
 0x10f   :  { %v106_v4 = vadd.f32 %v105_v48, %v70_v44 }
 0x111   :  { %v137_v18 = vadd.f32 %v136_v50, %v106_v4 }
 0x113   :  { %v168_v23 = vadd.f32 %v167_v51, %v137_v18 }
 0x115   :  { %v198_v52 = vpop.f32.mrf.mxu0  ;;  %v258_v54 = vpop.f32.mrf.mxu2 }
 0x116   :  { %v221_v53 = vpop.f32.mrf.mxu1  ;;  %v297_v55 = vpop.f32.mrf.mxu3  ;;  %v199_v25 = vadd.f32 %v198_v52, %v168_v23 }
 0x117   :  { %v222_v19 = vadd.f32 %v221_v53, %v195_v17 }
 0x119   :  { %v259_v24 = vadd.f32 %v258_v54, %v222_v19 }
 0x11b   :  { %v298_v27 = vadd.f32 %v297_v55, %v259_v24 }
 0x11d   :  { %v327_v57 = vpop.f32.mrf.mxu0  ;;  %v266_v58 = vpop.f32.mrf.mxu2 }
 0x11e   :  { %v225_v56 = vpop.f32.mrf.mxu1  ;;  %v301_v59 = vpop.f32.mrf.mxu3  ;;  %v328_v30 = vadd.f32 %v327_v57, %v298_v27 }
 0x11f   :  { %v226_v28 = vadd.f32 %v225_v56, %v199_v25 }
 0x121   :  { %v267_v35 = vadd.f32 %v266_v58, %v226_v28 }
 0x123   :  { %v302_v40 = vadd.f32 %v301_v59, %v267_v35 }
 0x125   :  { %v332_v60 = vpop.f32.mrf.mxu0  ;;  %v390_v62 = vpop.f32.mrf.mxu2 }
 0x126   :  { %v357_v61 = vpop.f32.mrf.mxu1  ;;  %v417_v63 = vpop.f32.mrf.mxu3  ;;  %v333_v45 = vadd.f32 %v332_v60, %v302_v40 }
 0x127   :  { %v358_v36 = vadd.f32 %v357_v61, %v328_v30  ;;  %v841_v61 = vpop.permute.xlu0 %840 }
 0x129   :  { %v391_v41 = vadd.f32 %v390_v62, %v358_v36 }
 0x12b   :  { %v418_v51 = vadd.f32 %v417_v63, %v391_v41  ;;  %v2646_v41 = vld [vmem:[%s3147_s2 + $0x20] sm:$0xff] }
 0x12d   :  { %v463_v1 = vpop.f32.mrf.mxu0  ;;  %v394_v2 = vpop.f32.mrf.mxu2 }
 0x12e   :  { %v363_v0 = vpop.f32.mrf.mxu1  ;;  %v2848_v3 = vpop.f32.mrf.mxu3 }
 0x12f   :  { %v364_v52 = vadd.f32 %v363_v0, %v333_v45 }
 0x131   :  { %v395_v59 = vadd.f32 %v394_v2, %v364_v52  ;;  %v846_v2 = vpop.permute.xlu1 %845  ;;  %v2651_v52 = vld [vmem:[%s3146_s1 + $0x50] sm:$0xff] }
 0x133   :  { %v422_v63 = vadd.f32 %v2848_v3, %v395_v59 }
 0x135   :  { %v471_v5 = vpop.f32.mrf.mxu0  ;;  %v532_v7 = vpop.f32.mrf.mxu2 }
 0x136   :  { %v502_v6 = vpop.f32.mrf.mxu1  ;;  %v562_v8 = vpop.f32.mrf.mxu3 }
 0x137   :  { %v503_v26 = vadd.f32 %v502_v6, %v463_v1 }
 0x139   :  { %v533_v31 = vadd.f32 %v532_v7, %v503_v26 }
 0x13b   :  { %v563_v37 = vadd.f32 %v562_v8, %v533_v31 }
 0x13d   :  { %v595_v13 = vpop.f32.mrf.mxu0  ;;  %v537_v14 = vpop.f32.mrf.mxu2 }
 0x13e   :  { %v506_v11 = vpop.f32.mrf.mxu1  ;;  %v568_v15 = vpop.f32.mrf.mxu3  ;;  %v596_v42 = vadd.f32 %v595_v13, %v563_v37  ;;  %v2645_v37 = vld [vmem:[%s3147_s2 + $0x10] sm:$0xff] }
 0x13f   :  { %v507_v38 = vadd.f32 %v506_v11, %v471_v5 }
 0x141   :  { %v538_v46 = vadd.f32 %v537_v14, %v507_v38 }
 0x143   :  { %v569_v55 = vadd.f32 %v568_v15, %v538_v46 }
 0x145   :  { %v599_v20 = vpop.f32.mrf.mxu0  ;;  %v670_v21 = vpop.f32.mrf.mxu2 }
 0x146   :  { %v622_v12 = vpop.f32.mrf.mxu1  ;;  %v709_v22 = vpop.f32.mrf.mxu3  ;;  %v600_v62 = vadd.f32 %v599_v20, %v569_v55 }
 0x147   :  { %v710_v39 = vadd.f32 %v709_v22, %v670_v21  ;;  %v623_v47 = vadd.f32 %v622_v12, %v596_v42 }
 0x149   :  { %v629_v56 = vadd.f32 %v623_v47, %v418_v51  ;;  %v2648_v51 = vld [vmem:[%s3147_s2 + $0x38] sm:$0xff] }
 0x14d   :  { %v678_v32 = vpop.f32.mrf.mxu2  ;;  %v739_v34 = vpop.f32.mrf.mxu0 }
 0x14e   :  { %v626_v29 = vpop.f32.mrf.mxu1  ;;  %v713_v33 = vpop.f32.mrf.mxu3  ;;  %v740_v43 = vadd.f32 %v739_v34, %v710_v39 }
 0x14f   :  { %v714_v57 = vadd.f32 %v713_v33, %v678_v32  ;;  %v627_v60 = vadd.f32 %v626_v29, %v600_v62 }
 0x151   :  { %v630_v13 = vadd.f32 %v627_v60, %v422_v63 }
 0x155   :  { %v802_v49 = vpop.f32.mrf.mxu2  ;;  %v744_v54 = vpop.f32.mrf.mxu0 }
 0x156   :  { %v769_v44 = vpop.f32.mrf.mxu1  ;;  %v829_v50 = vpop.f32.mrf.mxu3  ;;  %v745_v1 = vadd.f32 %v744_v54, %v714_v57  ;;  %v2652_v57 = vld [vmem:[%s3146_s1 + $0x58] sm:$0xff] }
 0x157   :  { %v770_v48 = vadd.f32 %v769_v44, %v740_v43 }
 0x159   :  { %v803_v53 = vadd.f32 %v802_v49, %v770_v48 }
 0x15b   :  { %v830_v58 = vadd.f32 %v829_v50, %v803_v53  ;;  %v2647_v50 = vld [vmem:[%s3147_s2 + $0x30] sm:$0xff]  ;;  %v923_v53 = vsel %vm31_vm0, %v2651_v52, 0 }
 0x15c   :  { %v2877_v54 = vand.u32 4294901760, %v923_v53 }
 0x15d   :  { %v836_v5 = vadd.f32 %v830_v58, %v629_v56  ;;  %v806_v9 = vpop.f32.mrf.mxu2 }
 0x15e   :  { %v775_v6 = vpop.f32.mrf.mxu1  ;;  %v833_v10 = vpop.f32.mrf.mxu3  ;;  %v947_v56 = vsub.f32 %v923_v53, %v2877_v54 }
 0x15f   :  { %v848_v7 = vadd.f32 %v841_v61, %v836_v5  ;;  %v776_v8 = vadd.f32 %v775_v6, %v745_v1  ;;  %v926_v61 = vsel %vm31_vm0, %v2652_v57, 0 }
 0x160   :  { %v948_v62 = vand.u32 4294901760, %v947_v56  ;;  %v2890_v6 = vand.u32 4294901760, %v926_v61 }
 0x161   :  { %v850_v0 = vmax.f32 %v848_v7, 0.0  ;;  %v807_v11 = vadd.f32 %v806_v9, %v776_v8 }
 0x162   :  { %v949_v7 = vsub.f32 %v947_v56, %v948_v62  ;;  %v955_v63 = vsub.f32 %v926_v61, %v2890_v6 }
 0x163   :  { %v834_v14 = vadd.f32 %v833_v10, %v807_v11  ;;  %v857_v15 = vsel %vm856_vm1, %v850_v0, 0.0  ;;  %v863_v16 = vmul.f32 %v850_v0, %v850_v0 }
 0x164   :  { %858 = vadd.xlane.f32.xlu2 %v857_v15 }
 0x165   :  { %v837_v4 = vadd.f32 %v834_v14, %v630_v13  ;;  %v865_v17 = vsel %vm856_vm1, %v863_v16, 0.0  ;;  %v950_v14 = vand.u32 4294901760, %v949_v7 }
 0x166   :  { %866 = vadd.xlane.f32.xlu0 %v865_v17  ;;  %v956_v17 = vand.u32 4294901760, %v955_v63 }
 0x167   :  { %v849_v18 = vadd.f32 %v846_v2, %v837_v4 }
 0x169   :  { %v851_v19 = vmax.f32 %v849_v18, 0.0 }
 0x16b   :  { %v860_v20 = vsel %vm856_vm1, %v851_v19, 0.0  ;;  %v864_v12 = vmul.f32 %v851_v19, %v851_v19 }
 0x16c   :  { %861 = vadd.xlane.f32.xlu1 %v860_v20 }
 0x16d   :  { %v868_v3 = vsel %vm856_vm1, %v864_v12, 0.0 }
 0x16e   :  { %869 = vadd.xlane.f32.xlu2 %v868_v3 }
 0x1d7   :  { %v859_v21 = vpop.xlane.xlu2 %858 }
 0x1d9   :  { %v867_v24 = vpop.xlane.xlu0 %866 }
 0x1df   :  { %v862_v22 = vpop.xlane.xlu1 %861 }
 0x1e0   :  { %v871_v23 = vadd.f32 %v862_v22, %v859_v21  ;;  %v957_v22 = vsub.f32 %v955_v63, %v956_v17 }
 0x1e1   :  { %v870_v25 = vpop.xlane.xlu2 %869 }
 0x1e2   :  { %v873_v26 = vmul.f32 0.01724138, %v871_v23  ;;  %v872_v27 = vadd.f32 %v870_v25, %v867_v24  ;;  %v2650_v23 = vld [vmem:[%s3146_s1 + $0x48] sm:$0xff] }
 0x1e4   :  { %v875_v28 = vmul.f32 %v873_v26, %v873_v26  ;;  %v874_v29 = vmul.f32 0.01724138, %v872_v27  ;;  %v1122_v27 = vsel %vm31_vm0, %v2650_v23, 0 }
 0x1e6   :  { %v876_v30 = vsub.f32 %v874_v29, %v875_v28  ;;  %v958_v29 = vand.u32 4294901760, %v957_v22 }
 0x1e8   :  { %v877_v31 = vadd.f32 1e-05, %v876_v30 }
 0x1ea   :  { %2676 = vrsqrt.f32 %v877_v31  ;;  %vm884_vm3 = vweird.f32 %v877_v31 }
 0x1f0   :  { %v2677_v32 = vpop.eup %2676 }
 0x1f1   :  { %v879_v33 = vmul.f32 %v2677_v32, %v877_v31  ;;  %vm885_vm2 = vweird.f32 %v2677_v32 }
 0x1f2   :  { %vm886_vm4 = vmor %vm884_vm3, %vm885_vm2 }
 0x1f3   :  { %v880_v34 = vmul.f32 %v2677_v32, %v879_v33  ;;  %v2916_v33 = vand.u32 4294901760, %v1122_v27 }
 0x1f5   :  { %v881_v35 = vmul.f32 0.5, %v880_v34 }
 0x1f7   :  { %v882_v36 = vsub.f32 1.5, %v881_v35 }
 0x1f9   :  { %v883_v38 = vmul.f32 %v2677_v32, %v882_v36 }
 0x1fb   :  { %v887_v39 = vsel %vm886_vm4, %v2677_v32, %v883_v38 }
 0x1fc   :  { %v888_v40 = vmul.f32 %v2645_v37, %v887_v39  ;;  %v2927_v37 = vsub.f32 %v1122_v27, %v2916_v33 }
 0x1fe   :  { %893 = vperm.xlu2 %2675, %v888_v40   ;;  %v889_v42 = vmul.f32 %v888_v40, %v873_v26 }
 0x200   :  { %v890_v43 = vsub.f32 %v2646_v41, %v889_v42  ;;  %v1152_v42 = vand.u32 4294901760, %v2927_v37 }
 0x202   :  { %900 = vperm.xlu1 %2674, %v890_v43  }
 0x258   :  { %v894_v44 = vpop.permute.xlu2 %893 }
 0x259   :  { %v896_v45 = vmul.f32 %v894_v44, %v850_v0  ;;  %v897_v46 = vmul.f32 %v894_v44, %v851_v19  ;;  %v2649_v0 = vld [vmem:[%s3146_s1 + $0x40] sm:$0xff] }
 0x25a   :  { %v1119_v2 = vsel %vm31_vm0, %v2649_v0, 0 }
 0x25b   :  { %v2902_v12 = vand.u32 4294901760, %v1119_v2 }
 0x25d   :  { %v2909_v26 = vsub.f32 %v1119_v2, %v2902_v12 }
 0x25f   :  { %v1144_v32 = vand.u32 4294901760, %v2909_v26 }
 0x261   :  { %v1145_v36 = vsub.f32 %v2909_v26, %v1144_v32 }
 0x263   :  { %v1146_v41 = vand.u32 4294901760, %v1145_v36 }
 0x274   :  { %v901_v47 = vpop.permute.xlu1 %900 }
 0x275   :  { %v903_v48 = vadd.f32 %v901_v47, %v896_v45  ;;  %v904_v49 = vadd.f32 %v901_v47, %v897_v46 }
 0x277   :  { %1319 = vrot.lane.b32.xlu1 %v904_v49, %s2681_s15  ;;  %918 = vrot.lane.b32.xlu0 %v904_v49, %s2680_s14  ;;  %v2879_v55 = vand.u32 4294901760, %v904_v49  ;;  %v2885_v58 = vand.u32 4294901760, %v903_v48 }
 0x278   :  { %916 = vrot.lane.b32.xlu2 %v903_v48, %s2680_s14 }
 0x279   :  { %v1174_v1 = vsub.f32 %v904_v49, %v2879_v55  ;;  %v1180_v5 = vsub.f32 %v903_v48, %v2885_v58 }
 0x27b   :  { %v1175_v8 = vand.u32 4294901760, %v1174_v1  ;;  %v1181_v10 = vand.u32 4294901760, %v1180_v5 }
 0x27d   :  { %v1176_v15 = vsub.f32 %v1174_v1, %v1175_v8  ;;  %v1182_v4 = vsub.f32 %v1180_v5, %v1181_v10 }
 0x27f   :  { %1524 = vrot.lane.b32.xlu1 %v903_v48, %s2682_s16  ;;  %1317 = vrot.lane.b32.xlu0 %v903_v48, %s2681_s15  ;;  %v1177_v20 = vand.u32 4294901760, %v1176_v15  ;;  %v1183_v21 = vand.u32 4294901760, %v1182_v4  ;;  %v1153_v48 = vsub.f32 %v2927_v37, %v1152_v42  ;;  %v2656_v4 = vld [vmem:[%s3146_s1 + $0x78] sm:$0xff] }
 0x280   :  { %1526 = vrot.lane.b32.xlu2 %v904_v49, %s2682_s16 }
 0x281   :  { %v1154_v53 = vand.u32 4294901760, %v1153_v48 }
 0x287   :  { %1730 = vperm.xlu0 %2673, %v2647_v50  }
 0x288   :  { %1735 = vperm.xlu2 %2675, %v2648_v51  }
 0x2d2   :  { %v917_v59 = vpop.permute.xlu2 %916 }
 0x2d3   :  { %v2892_v60 = vand.u32 4294901760, %v917_v59 }
 0x2d5   :  { %v984_v11 = vsub.f32 %v917_v59, %v2892_v60 }
 0x2d7   :  { %v985_v19 = vand.u32 4294901760, %v984_v11 }
 0x2d9   :  { %v986_v25 = vsub.f32 %v984_v11, %v985_v19 }
 0x2da   :  { %v1527_v39 = vpop.permute.xlu2 %1526 }
 0x2db   :  { %v987_v30 = vand.u32 4294901760, %v986_v25  ;;  %v2935_v45 = vand.u32 4294901760, %v1527_v39 }
 0x2dd   :  { %v1586_v50 = vsub.f32 %v1527_v39, %v2935_v45 }
 0x2df   :  { %v1587_v57 = vand.u32 4294901760, %v1586_v50 }
 0x2e9   :  { %v919_v9 = vpop.permute.xlu0 %918  ;;  %v1320_v28 = vpop.permute.xlu1 %1319 }
 0x2ea   :  { %v942_v13 = vand.u32 4294901760, %v919_v9  ;;  %v2918_v34 = vand.u32 4294901760, %v1320_v28 }
 0x2ec   :  { %v978_v16 = vsub.f32 %v919_v9, %v942_v13  ;;  %943 = vmatpush.msra.mxu0 %v942_v13  ;;  %1044 = vmatpush.msra.mxu3 %v942_v13  ;;  %v1379_v38 = vsub.f32 %v1320_v28, %v2918_v34 }
 0x2ee   :  { %v979_v18 = vand.u32 4294901760, %v978_v16  ;;  %945 = vmatpush.msra.mxu0 %v2892_v60  ;;  %1014 = vmatpush.msra.mxu2 %v978_v16  ;;  %v1380_v43 = vand.u32 4294901760, %v1379_v38 }
 0x2ef   :  { %1046 = vmatpush.msra.mxu3 %v2892_v60  ;;  %951 = vmatmul.f32.vlgmr.msra.gmra.mxu0 %v950_v14 }
 0x2f0   :  { %v980_v3 = vsub.f32 %v978_v16, %v979_v18  ;;  %1050 = vmatmul.f32.vlgmr.msra.gmra.mxu3 %v948_v62  ;;  %1017 = vmatpush.msra.mxu2 %v984_v11  ;;  %v1381_v49 = vsub.f32 %v1379_v38, %v1380_v43  ;;  %v1588_v62 = vsub.f32 %v1586_v50, %v1587_v57  ;;  %v2655_v11 = vld [vmem:[%s3146_s1 + $0x70] sm:$0xff] }
 0x2f1   :  { %1178 = vmatpush.msrb.mxu3 %v1177_v20  ;;  %1077 = vmatpush.msrb.mxu0 %v979_v18  ;;  %v1318_v31 = vpop.permute.xlu0 %1317  ;;  %v1525_v44 = vpop.permute.xlu1 %1524  ;;  %v1534_v18 = vsel %vm31_vm0, %v2656_v4, 0 }
 0x2f2   :  { %v981_v24 = vand.u32 4294901760, %v980_v3  ;;  %1020 = vmatmul.f32.vlgmr.msra.gmra.mxu2 %v947_v56  ;;  %v2921_v35 = vand.u32 4294901760, %v1318_v31  ;;  %v2941_v47 = vand.u32 4294901760, %v1525_v44  ;;  %v1382_v56 = vand.u32 4294901760, %v1381_v49 }
 0x2f3   :  { %1139 = vmatpush.msrb.mxu2 %v2879_v55  ;;  %1184 = vmatpush.msrb.mxu3 %v1183_v21  ;;  %v1589_v7 = vand.u32 4294901760, %v1588_v62 }
 0x2f4   :  { %1081 = vmatpush.msrb.mxu0 %v985_v19  ;;  %982 = vmatpush.msra.mxu1 %v981_v24  ;;  %v1385_v40 = vsub.f32 %v1318_v31, %v2921_v35  ;;  %v1592_v52 = vsub.f32 %v1525_v44, %v2941_v47 }
 0x2f5   :  { %1302 = vmatpush.msra.mxu3 %v2879_v55  ;;  %1141 = vmatpush.msrb.mxu2 %v2885_v58 }
 0x2f6   :  { %1210 = vmatpush.msra.mxu0 %v1174_v1  ;;  %988 = vmatpush.msra.mxu1 %v987_v30  ;;  %v1386_v46 = vand.u32 4294901760, %v1385_v40  ;;  %v1593_v59 = vand.u32 4294901760, %v1592_v52 }
 0x2f7   :  { %1273 = vmatpush.msra.mxu2 %v1175_v8  ;;  %1304 = vmatpush.msra.mxu3 %v2885_v58 }
 0x2f8   :  { %1213 = vmatpush.msra.mxu0 %v1180_v5  ;;  %990 = vmatmul.f32.vlgmr.msra.gmra.mxu1 %v2877_v54  ;;  %v1387_v51 = vsub.f32 %v1385_v40, %v1386_v46  ;;  %v1594_v5 = vsub.f32 %v1592_v52, %v1593_v59 }
 0x2f9   :  { %1277 = vmatpush.msra.mxu2 %v1181_v10  ;;  %959 = vmatmul.f32.gmra.mxu0 %v958_v29 }
 0x2fa   :  { %1056 = vmatmul.f32.gmra.mxu3 %v956_v17  ;;  %1106 = vmatpush.msrb.mxu1 %v942_v13  ;;  %v1595_v9 = vand.u32 4294901760, %v1594_v5  ;;  %v1531_v13 = vsel %vm31_vm0, %v2655_v11, 0 }
 0x2fb   :  { %1025 = vmatmul.f32.gmra.mxu2 %v955_v63  ;;  %v1554_v16 = vand.u32 4294901760, %v1531_v13 }
 0x2fc   :  { %1108 = vmatpush.msrb.mxu1 %v2892_v60  ;;  %v2654_v60 = vld [vmem:[%s3146_s1 + $0x68] sm:$0xff] }
 0x2fd   :  { %v1327_v8 = vsel %vm31_vm0, %v2654_v60, 0  ;;  %v1555_v17 = vsub.f32 %v1531_v13, %v1554_v16 }
 0x2fe   :  { %1240 = vmatpush.msra.mxu1 %v2879_v55  ;;  %v2653_v55 = vld [vmem:[%s3146_s1 + $0x60] sm:$0xff]  ;;  %v1355_v63 = vand.u32 4294901760, %v1327_v8 }
 0x2ff   :  { %v1324_v61 = vsel %vm31_vm0, %v2653_v55, 0  ;;  %v1556_v20 = vand.u32 4294901760, %v1555_v17 }
 0x300   :  { %1242 = vmatpush.msra.mxu1 %v2885_v58  ;;  %v1388_v58 = vand.u32 4294901760, %v1387_v51  ;;  %v2958_v1 = vand.u32 4294901760, %v1324_v61  ;;  %v1356_v0 = vsub.f32 %v1327_v8, %v1355_v63 }
 0x301   :  { %994 = vmatmul.f32.gmra.mxu1 %v2890_v6  ;;  %1083 = vmatmul.f32.vlgmr.msrb.gmra.mxu0 %v2877_v54  ;;  %v1557_v3 = vsub.f32 %v1555_v17, %v1556_v20 }
 0x302   :  { %1186 = vmatmul.f32.vlgmr.msrb.gmra.mxu3 %v2902_v12  ;;  %1344 = vmatpush.msrb.mxu0 %v2918_v34  ;;  %v1357_v15 = vand.u32 4294901760, %v1356_v0 }
 0x303   :  { %1445 = vmatpush.msrb.mxu3 %v2918_v34  ;;  %1147 = vmatmul.f32.vlgmr.msrb.gmra.mxu2 %v1146_v41  ;;  %v1558_v22 = vand.u32 4294901760, %v1557_v3 }
 0x304   :  { %1346 = vmatpush.msrb.mxu0 %v2921_v35  ;;  %1415 = vmatpush.msrb.mxu2 %v1379_v38  ;;  %v1358_v2 = vsub.f32 %v1356_v0, %v1357_v15 }
 0x305   :  { %1447 = vmatpush.msrb.mxu3 %v2921_v35 }
 0x306   :  { %1418 = vmatpush.msrb.mxu2 %v1385_v40  ;;  %v1359_v19 = vand.u32 4294901760, %v1358_v2 }
 0x309   :  { %1087 = vmatmul.f32.gmra.mxu0 %v2890_v6  ;;  %1110 = vmatmul.f32.vlgmr.msrb.gmra.mxu1 %v2877_v54  ;;  %v1348_v54 = vsub.f32 %v1324_v61, %v2958_v1 }
 0x30a   :  { %1190 = vmatmul.f32.gmra.mxu3 %v2916_v33  ;;  %1383 = vmatpush.msrb.mxu1 %v1382_v56 }
 0x30b   :  { %1155 = vmatmul.f32.gmra.mxu2 %v1154_v53  ;;  %v1349_v10 = vand.u32 4294901760, %v1348_v54 }
 0x30c   :  { %1389 = vmatpush.msrb.mxu1 %v1388_v58 }
 0x311   :  { %1114 = vmatmul.f32.gmra.mxu1 %v2890_v6  ;;  %1216 = vmatmul.f32.vlgmr.msra.gmra.mxu0 %v2909_v26  ;;  %v1350_v6 = vsub.f32 %v1348_v54, %v1349_v10 }
 0x312   :  { %1306 = vmatmul.f32.vlgmr.msra.gmra.mxu3 %v2902_v12  ;;  %1478 = vmatpush.msra.mxu0 %v1380_v43 }
 0x313   :  { %1590 = vmatpush.msra.mxu3 %v1589_v7  ;;  %1279 = vmatmul.f32.vlgmr.msra.gmra.mxu2 %v2902_v12  ;;  %v1351_v14 = vand.u32 4294901760, %v1350_v6  ;;  %v1562_v12 = vand.u32 4294901760, %v1534_v18 }
 0x314   :  { %1482 = vmatpush.msra.mxu0 %v1386_v46  ;;  %1551 = vmatpush.msra.mxu2 %v2935_v45 }
 0x315   :  { %1596 = vmatpush.msra.mxu3 %v1595_v9  ;;  %v1563_v21 = vsub.f32 %v1534_v18, %v1562_v12 }
 0x316   :  { %1553 = vmatpush.msra.mxu2 %v2941_v47 }
 0x317   :  { %v1564_v23 = vand.u32 4294901760, %v1563_v21 }
 0x319   :  { %1221 = vmatmul.f32.gmra.mxu0 %v2927_v37  ;;  %1246 = vmatmul.f32.vlgmr.msra.gmra.mxu1 %v1144_v32  ;;  %v1565_v24 = vsub.f32 %v1563_v21, %v1564_v23 }
 0x31a   :  { %1310 = vmatmul.f32.gmra.mxu3 %v2916_v33  ;;  %1507 = vmatpush.msra.mxu1 %v2918_v34 }
 0x31b   :  { %1283 = vmatmul.f32.gmra.mxu2 %v2916_v33  ;;  %v1566_v25 = vand.u32 4294901760, %v1565_v24 }
 0x31c   :  { %1509 = vmatpush.msra.mxu1 %v2921_v35 }
 0x321   :  { %1252 = vmatmul.f32.gmra.mxu1 %v1152_v42  ;;  %1352 = vmatmul.f32.vlgmr.msrb.gmra.mxu0 %v1351_v14 }
 0x322   :  { %1451 = vmatmul.f32.vlgmr.msrb.gmra.mxu3 %v1349_v10  ;;  %1622 = vmatpush.msrb.mxu0 %v1586_v50 }
 0x323   :  { %1714 = vmatpush.msrb.mxu3 %v2935_v45  ;;  %1421 = vmatmul.f32.vlgmr.msrb.gmra.mxu2 %v1348_v54 }
 0x324   :  { %1625 = vmatpush.msrb.mxu0 %v1592_v52  ;;  %1685 = vmatpush.msrb.mxu2 %v1587_v57 }
 0x325   :  { %1716 = vmatpush.msrb.mxu3 %v2941_v47 }
 0x326   :  { %1689 = vmatpush.msrb.mxu2 %v1593_v59 }
 0x329   :  { %1360 = vmatmul.f32.gmra.mxu0 %v1359_v19  ;;  %1391 = vmatmul.f32.vlgmr.msrb.gmra.mxu1 %v2958_v1 }
 0x32a   :  { %1652 = vmatpush.msrb.mxu1 %v2935_v45  ;;  %1457 = vmatmul.f32.gmra.mxu3 %v1357_v15 }
 0x32b   :  { %1426 = vmatmul.f32.gmra.mxu2 %v1356_v0 }
 0x32c   :  { %1654 = vmatpush.msrb.mxu1 %v2941_v47 }
 0x331   :  { %1395 = vmatmul.f32.gmra.mxu1 %v1355_v63  ;;  %1484 = vmatmul.f32.vlgmr.msra.gmra.mxu0 %v2958_v1 }
 0x332   :  { %1598 = vmatmul.f32.vlgmr.msra.gmra.mxu3 %v1554_v16 }
 0x333   :  { %1559 = vmatmul.f32.vlgmr.msra.gmra.mxu2 %v1558_v22 }
 0x339   :  { %1488 = vmatmul.f32.gmra.mxu0 %v1355_v63  ;;  %1511 = vmatmul.f32.vlgmr.msra.gmra.mxu1 %v2958_v1 }
 0x33a   :  { %1602 = vmatmul.f32.gmra.mxu3 %v1562_v12 }
 0x33b   :  { %1567 = vmatmul.f32.gmra.mxu2 %v1566_v25 }
 0x341   :  { %1515 = vmatmul.f32.gmra.mxu1 %v1355_v63  ;;  %1628 = vmatmul.f32.vlgmr.msrb.gmra.mxu0 %v1555_v17 }
 0x342   :  { %1718 = vmatmul.f32.vlgmr.msrb.gmra.mxu3 %v1554_v16 }
 0x343   :  { %1691 = vmatmul.f32.vlgmr.msrb.gmra.mxu2 %v1554_v16 }
 0x349   :  { %1633 = vmatmul.f32.gmra.mxu0 %v1563_v21  ;;  %1658 = vmatmul.f32.vlgmr.msrb.gmra.mxu1 %v1556_v20 }
 0x34a   :  { %1722 = vmatmul.f32.gmra.mxu3 %v1562_v12 }
 0x34b   :  { %1695 = vmatmul.f32.gmra.mxu2 %v1562_v12 }
 0x351   :  { %1664 = vmatmul.f32.gmra.mxu1 %v1564_v23 }
 0x36c   :  { %v952_v26 = vpop.f32.mrf.mxu0 }
 0x373   :  { %v1051_v27 = vpop.f32.mrf.mxu3 }
 0x375   :  { %v1021_v28 = vpop.f32.mrf.mxu2  ;;  %v991_v30 = vpop.f32.mrf.mxu1 }
 0x376   :  { %v960_v29 = vpop.f32.mrf.mxu0  ;;  %v992_v56 = vadd.f32 %v991_v30, %v952_v26 }
 0x378   :  { %v1022_v57 = vadd.f32 %v1021_v28, %v992_v56 }
 0x37a   :  { %v1052_v1 = vadd.f32 %v1051_v27, %v1022_v57 }
 0x37d   :  { %v1057_v31 = vpop.f32.mrf.mxu3 }
 0x37e   :  { %v995_v32 = vpop.f32.mrf.mxu1  ;;  %v1084_v33 = vpop.f32.mrf.mxu0 }
 0x37f   :  { %v1026_v34 = vpop.f32.mrf.mxu2  ;;  %v996_v5 = vadd.f32 %v995_v32, %v960_v29  ;;  %v1085_v60 = vadd.f32 %v1084_v33, %v1052_v1 }
 0x381   :  { %v1027_v7 = vadd.f32 %v1026_v34, %v996_v5 }
 0x383   :  { %v1058_v6 = vadd.f32 %v1057_v31, %v1027_v7 }
 0x385   :  { %v1187_v35 = vpop.f32.mrf.mxu3 }
 0x386   :  { %v1088_v36 = vpop.f32.mrf.mxu0  ;;  %v1111_v37 = vpop.f32.mrf.mxu1 }
 0x387   :  { %v1148_v38 = vpop.f32.mrf.mxu2  ;;  %v1112_v54 = vadd.f32 %v1111_v37, %v1085_v60  ;;  %v1089_v11 = vadd.f32 %v1088_v36, %v1058_v6  ;;  %v1736_v60 = vpop.permute.xlu2 %1735 }
 0x389   :  { %v1149_v0 = vadd.f32 %v1148_v38, %v1112_v54 }
 0x38b   :  { %v1188_v14 = vadd.f32 %v1187_v35, %v1149_v0 }
 0x38d   :  { %v1191_v39 = vpop.f32.mrf.mxu3 }
 0x38e   :  { %v1115_v40 = vpop.f32.mrf.mxu1  ;;  %v1217_v41 = vpop.f32.mrf.mxu0 }
 0x38f   :  { %v1156_v42 = vpop.f32.mrf.mxu2  ;;  %v1116_v15 = vadd.f32 %v1115_v40, %v1089_v11  ;;  %v1218_v4 = vadd.f32 %v1217_v41, %v1188_v14 }
 0x391   :  { %v1157_v20 = vadd.f32 %v1156_v42, %v1116_v15 }
 0x393   :  { %v1192_v23 = vadd.f32 %v1191_v39, %v1157_v20 }
 0x395   :  { %v1307_v43 = vpop.f32.mrf.mxu3 }
 0x396   :  { %v1222_v44 = vpop.f32.mrf.mxu0  ;;  %v1247_v45 = vpop.f32.mrf.mxu1 }
 0x397   :  { %v1280_v46 = vpop.f32.mrf.mxu2  ;;  %v1248_v12 = vadd.f32 %v1247_v45, %v1218_v4  ;;  %v1223_v29 = vadd.f32 %v1222_v44, %v1192_v23 }
 0x399   :  { %v1281_v24 = vadd.f32 %v1280_v46, %v1248_v12 }
 0x39b   :  { %v1308_v34 = vadd.f32 %v1307_v43, %v1281_v24  ;;  %v2658_v24 = vld [vmem:[%s3147_s2 + $0x50] sm:$0xff] }
 0x39d   :  { %v2995_v47 = vpop.f32.mrf.mxu3 }
 0x39e   :  { %v1253_v48 = vpop.f32.mrf.mxu1  ;;  %v1353_v49 = vpop.f32.mrf.mxu0 }
 0x39f   :  { %v1284_v50 = vpop.f32.mrf.mxu2  ;;  %v1254_v35 = vadd.f32 %v1253_v48, %v1223_v29 }
 0x3a1   :  { %v1285_v45 = vadd.f32 %v1284_v50, %v1254_v35  ;;  %v2663_v35 = vld [vmem:[%s3146_s1 + $0x90] sm:$0xff] }
 0x3a3   :  { %v1312_v43 = vadd.f32 %v2995_v47, %v1285_v45 }
 0x3a5   :  { %v1452_v51 = vpop.f32.mrf.mxu3 }
 0x3a6   :  { %v1361_v52 = vpop.f32.mrf.mxu0  ;;  %v1392_v53 = vpop.f32.mrf.mxu1 }
 0x3a7   :  { %v1422_v55 = vpop.f32.mrf.mxu2  ;;  %v1393_v13 = vadd.f32 %v1392_v53, %v1353_v49 }
 0x3a9   :  { %v1423_v17 = vadd.f32 %v1422_v55, %v1393_v13 }
 0x3ab   :  { %v1453_v3 = vadd.f32 %v1452_v51, %v1423_v17  ;;  %v1731_v51 = vpop.permute.xlu0 %1730 }
 0x3ad   :  { %v1458_v58 = vpop.f32.mrf.mxu3 }
 0x3ae   :  { %v1396_v61 = vpop.f32.mrf.mxu1  ;;  %v1485_v59 = vpop.f32.mrf.mxu0 }
 0x3af   :  { %v1427_v62 = vpop.f32.mrf.mxu2  ;;  %v1397_v21 = vadd.f32 %v1396_v61, %v1361_v52  ;;  %v1486_v25 = vadd.f32 %v1485_v59, %v1453_v3  ;;  %v2657_v3 = vld [vmem:[%s3147_s2 + $0x40] sm:$0xff] }
 0x3b1   :  { %v1428_v30 = vadd.f32 %v1427_v62, %v1397_v21 }
 0x3b3   :  { %v1459_v38 = vadd.f32 %v1458_v58, %v1428_v30 }
 0x3b5   :  { %v1599_v8 = vpop.f32.mrf.mxu3 }
 0x3b6   :  { %v1489_v9 = vpop.f32.mrf.mxu0  ;;  %v1512_v10 = vpop.f32.mrf.mxu1 }
 0x3b7   :  { %v1560_v63 = vpop.f32.mrf.mxu2  ;;  %v1513_v31 = vadd.f32 %v1512_v10, %v1486_v25  ;;  %v1490_v39 = vadd.f32 %v1489_v9, %v1459_v38 }
 0x3b8   :  { %v1600_v22 = vadd.f32 %v1599_v8, %v1560_v63 }
 0x3b9   :  { %v1519_v40 = vadd.f32 %v1513_v31, %v1308_v34  ;;  %v2659_v34 = vld [vmem:[%s3147_s2 + $0x60] sm:$0xff] }
 0x3bd   :  { %v1603_v2 = vpop.f32.mrf.mxu3 }
 0x3be   :  { %v1516_v16 = vpop.f32.mrf.mxu1  ;;  %v1629_v19 = vpop.f32.mrf.mxu0 }
 0x3bf   :  { %v1568_v18 = vpop.f32.mrf.mxu2  ;;  %v1630_v26 = vadd.f32 %v1629_v19, %v1600_v22  ;;  %v1517_v53 = vadd.f32 %v1516_v16, %v1490_v39 }
 0x3c0   :  { %v1604_v41 = vadd.f32 %v1603_v2, %v1568_v18 }
 0x3c1   :  { %v1520_v58 = vadd.f32 %v1517_v53, %v1312_v43 }
 0x3c5   :  { %v1719_v28 = vpop.f32.mrf.mxu3 }
 0x3c6   :  { %v1659_v27 = vpop.f32.mrf.mxu1  ;;  %v1634_v37 = vpop.f32.mrf.mxu0 }
 0x3c7   :  { %v1660_v32 = vadd.f32 %v1659_v27, %v1630_v26  ;;  %v1692_v33 = vpop.f32.mrf.mxu2  ;;  %v1635_v46 = vadd.f32 %v1634_v37, %v1604_v41  ;;  %v2664_v41 = vld [vmem:[%s3146_s1 + $0x98] sm:$0xff] }
 0x3c8   :  { %v1816_v45 = vsel %vm31_vm0, %v2664_v41, 0 }
 0x3c9   :  { %v1693_v36 = vadd.f32 %v1692_v33, %v1660_v32  ;;  %v2660_v33 = vld [vmem:[%s3147_s2 + $0x68] sm:$0xff] }
 0x3cb   :  { %v1720_v42 = vadd.f32 %v1719_v28, %v1693_v36  ;;  %v1813_v36 = vsel %vm31_vm0, %v2663_v35, 0 }
 0x3cc   :  { %v3024_v37 = vand.u32 4294901760, %v1813_v36 }
 0x3cd   :  { %v1726_v49 = vadd.f32 %v1720_v42, %v1519_v40  ;;  %v1723_v57 = vpop.f32.mrf.mxu3 }
 0x3ce   :  { %v1665_v52 = vpop.f32.mrf.mxu1  ;;  %v1837_v40 = vsub.f32 %v1813_v36, %v3024_v37 }
 0x3cf   :  { %v1738_v44 = vadd.f32 %v1731_v51, %v1726_v49  ;;  %v1666_v55 = vadd.f32 %v1665_v52, %v1635_v46  ;;  %v1696_v56 = vpop.f32.mrf.mxu2  ;;  %v3037_v51 = vand.u32 4294901760, %v1816_v45 }
 0x3d0   :  { %v1838_v39 = vand.u32 4294901760, %v1837_v40 }
 0x3d1   :  { %v1697_v48 = vadd.f32 %v1696_v56, %v1666_v55  ;;  %v1740_v61 = vmax.f32 %v1738_v44, 0.0  ;;  %v1845_v56 = vsub.f32 %v1816_v45, %v3037_v51 }
 0x3d2   :  { %v1839_v52 = vsub.f32 %v1837_v40, %v1838_v39 }
 0x3d3   :  { %v1724_v59 = vadd.f32 %v1723_v57, %v1697_v48  ;;  %v1747_v62 = vsel %vm1746_vm5, %v1740_v61, 0.0  ;;  %v1753_v50 = vmul.f32 %v1740_v61, %v1740_v61  ;;  %v2661_v57 = vld [vmem:[%s3146_s1 + $0x80] sm:$0xff] }
 0x3d4   :  { %1748 = vadd.xlane.f32.xlu1 %v1747_v62 }
 0x3d5   :  { %v1727_v1 = vadd.f32 %v1724_v59, %v1520_v58  ;;  %v1755_v5 = vsel %vm1746_vm5, %v1753_v50, 0.0  ;;  %v1840_v58 = vand.u32 4294901760, %v1839_v52  ;;  %v2009_v50 = vsel %vm31_vm0, %v2661_v57, 0 }
 0x3d6   :  { %1756 = vadd.xlane.f32.xlu2 %v1755_v5 }
 0x3d7   :  { %v1739_v7 = vadd.f32 %v1736_v60, %v1727_v1  ;;  %v1846_v60 = vand.u32 4294901760, %v1845_v56 }
 0x3d9   :  { %v1741_v54 = vmax.f32 %v1739_v7, 0.0 }
 0x3db   :  { %v1750_v8 = vsel %vm1746_vm5, %v1741_v54, 0.0  ;;  %v1754_v9 = vmul.f32 %v1741_v54, %v1741_v54 }
 0x3dc   :  { %1751 = vadd.xlane.f32.xlu0 %v1750_v8 }
 0x3dd   :  { %v1758_v47 = vsel %vm1746_vm5, %v1754_v9, 0.0  ;;  %v3044_v9 = vand.u32 4294901760, %v2009_v50 }
 0x3de   :  { %1759 = vadd.xlane.f32.xlu1 %v1758_v47 }
 0x447   :  { %v1749_v10 = vpop.xlane.xlu1 %1748 }
 0x449   :  { %v1757_v0 = vpop.xlane.xlu2 %1756 }
 0x44f   :  { %v1752_v63 = vpop.xlane.xlu0 %1751 }
 0x450   :  { %v1761_v6 = vadd.f32 %v1752_v63, %v1749_v10  ;;  %v1847_v63 = vsub.f32 %v1845_v56, %v1846_v60 }
 0x451   :  { %v1760_v11 = vpop.xlane.xlu1 %1759 }
 0x452   :  { %v1763_v13 = vmul.f32 0.01923077, %v1761_v6  ;;  %v1762_v14 = vadd.f32 %v1760_v11, %v1757_v0  ;;  %v2662_v6 = vld [vmem:[%s3146_s1 + $0x88] sm:$0xff] }
 0x454   :  { %v1765_v15 = vmul.f32 %v1763_v13, %v1763_v13  ;;  %v1764_v16 = vmul.f32 0.01923077, %v1762_v14  ;;  %v2012_v14 = vsel %vm31_vm0, %v2662_v6, 0 }
 0x456   :  { %v1766_v2 = vsub.f32 %v1764_v16, %v1765_v15  ;;  %v1848_v16 = vand.u32 4294901760, %v1847_v63 }
 0x458   :  { %v1767_v4 = vadd.f32 1e-05, %v1766_v2 }
 0x45a   :  { %2678 = vrsqrt.f32 %v1767_v4  ;;  %vm1774_vm7 = vweird.f32 %v1767_v4 }
 0x460   :  { %v2679_v17 = vpop.eup %2678 }
 0x461   :  { %v1769_v18 = vmul.f32 %v2679_v17, %v1767_v4  ;;  %vm1775_vm6 = vweird.f32 %v2679_v17 }
 0x462   :  { %vm1776_vm8 = vmor %vm1774_vm7, %vm1775_vm6 }
 0x463   :  { %v1770_v19 = vmul.f32 %v2679_v17, %v1769_v18  ;;  %v3058_v18 = vand.u32 4294901760, %v2012_v14 }
 0x465   :  { %v1771_v20 = vmul.f32 0.5, %v1770_v19 }
 0x467   :  { %v1772_v12 = vsub.f32 1.5, %v1771_v20 }
 0x469   :  { %v1773_v21 = vmul.f32 %v2679_v17, %v1772_v12 }
 0x46b   :  { %v1777_v22 = vsel %vm1776_vm8, %v2679_v17, %v1773_v21 }
 0x46c   :  { %v1778_v23 = vmul.f32 %v2657_v3, %v1777_v22  ;;  %v3069_v3 = vsub.f32 %v2012_v14, %v3058_v18 }
 0x46e   :  { %1783 = vperm.xlu0 %2673, %v1778_v23   ;;  %v1779_v25 = vmul.f32 %v1778_v23, %v1763_v13  ;;  %v3051_v13 = vsub.f32 %v2009_v50, %v3044_v9 }
 0x470   :  { %v1780_v26 = vsub.f32 %v2658_v24, %v1779_v25  ;;  %v2034_v17 = vand.u32 4294901760, %v3051_v13  ;;  %v2042_v25 = vand.u32 4294901760, %v3069_v3 }
 0x472   :  { %1790 = vperm.xlu2 %2675, %v1780_v26   ;;  %v2035_v12 = vsub.f32 %v3051_v13, %v2034_v17 }
 0x474   :  { %v2036_v24 = vand.u32 4294901760, %v2035_v12 }
 0x4cc   :  { %v1791_v30 = vpop.permute.xlu2 %1790 }
 0x4e0   :  { %v1784_v27 = vpop.permute.xlu0 %1783 }
 0x4e1   :  { %v1786_v28 = vmul.f32 %v1784_v27, %v1740_v61  ;;  %v1787_v29 = vmul.f32 %v1784_v27, %v1741_v54 }
 0x4e3   :  { %v1793_v31 = vadd.f32 %v1791_v30, %v1786_v28  ;;  %v1794_v32 = vadd.f32 %v1791_v30, %v1787_v29 }
 0x4e5   :  { %2209 = vrot.lane.b32.xlu2 %v1794_v32, %s2681_s15  ;;  %1808 = vrot.lane.b32.xlu1 %v1794_v32, %s2680_s14  ;;  %v3026_v38 = vand.u32 4294901760, %v1794_v32  ;;  %v3032_v42 = vand.u32 4294901760, %v1793_v31 }
 0x4e6   :  { %1806 = vrot.lane.b32.xlu0 %v1793_v31, %s2680_s14 }
 0x4e7   :  { %v2064_v46 = vsub.f32 %v1794_v32, %v3026_v38  ;;  %v2070_v49 = vsub.f32 %v1793_v31, %v3032_v42 }
 0x4e9   :  { %v2065_v53 = vand.u32 4294901760, %v2064_v46  ;;  %v2071_v55 = vand.u32 4294901760, %v2070_v49 }
 0x4eb   :  { %v2066_v59 = vsub.f32 %v2064_v46, %v2065_v53  ;;  %v2072_v5 = vsub.f32 %v2070_v49, %v2071_v55 }
 0x4ed   :  { %2416 = vrot.lane.b32.xlu1 %v1794_v32, %s2682_s16  ;;  %2414 = vrot.lane.b32.xlu2 %v1793_v31, %s2682_s16  ;;  %v2067_v54 = vand.u32 4294901760, %v2066_v59  ;;  %v2073_v10 = vand.u32 4294901760, %v2072_v5  ;;  %v2668_v5 = vld [vmem:[%s3146_s1 + $0xb8] sm:$0xff] }
 0x4ee   :  { %2207 = vrot.lane.b32.xlu0 %v1793_v31, %s2681_s15  ;;  %v2043_v31 = vsub.f32 %v3069_v3, %v2042_v25 }
 0x4f0   :  { %v2044_v36 = vand.u32 4294901760, %v2043_v31 }
 0x4f5   :  { %2625 = vperm.xlu1 %2674, %v2660_v33  }
 0x4f6   :  { %2620 = vperm.xlu0 %2673, %v2659_v34  }
 0x53f   :  { %v2210_v15 = vpop.permute.xlu2 %2209 }
 0x540   :  { %v3060_v19 = vand.u32 4294901760, %v2210_v15 }
 0x542   :  { %v2269_v21 = vsub.f32 %v2210_v15, %v3060_v19 }
 0x544   :  { %v2270_v26 = vand.u32 4294901760, %v2269_v21 }
 0x546   :  { %v2271_v32 = vsub.f32 %v2269_v21, %v2270_v26 }
 0x547   :  { %v2415_v27 = vpop.permute.xlu2 %2414 }
 0x548   :  { %v3082_v30 = vand.u32 4294901760, %v2415_v27 }
 0x54a   :  { %v2482_v35 = vsub.f32 %v2415_v27, %v3082_v30 }
 0x557   :  { %v1809_v44 = vpop.permute.xlu1 %1808 }
 0x558   :  { %v1832_v43 = vand.u32 4294901760, %v1809_v44  ;;  %v1807_v48 = vpop.permute.xlu0 %1806 }
 0x559   :  { %v1834_v61 = vand.u32 4294901760, %v1807_v48 }
 0x55a   :  { %v1868_v62 = vsub.f32 %v1809_v44, %v1832_v43  ;;  %1833 = vmatpush.msra.mxu0 %v1832_v43  ;;  %1934 = vmatpush.msra.mxu3 %v1832_v43 }
 0x55b   :  { %v1874_v1 = vsub.f32 %v1807_v48, %v1834_v61 }
 0x55c   :  { %v1869_v7 = vand.u32 4294901760, %v1868_v62  ;;  %1835 = vmatpush.msra.mxu0 %v1834_v61  ;;  %1904 = vmatpush.msra.mxu2 %v1868_v62 }
 0x55d   :  { %1936 = vmatpush.msra.mxu3 %v1834_v61  ;;  %1841 = vmatmul.f32.vlgmr.msra.gmra.mxu0 %v1840_v58  ;;  %v1875_v8 = vand.u32 4294901760, %v1874_v1 }
 0x55e   :  { %v1870_v47 = vsub.f32 %v1868_v62, %v1869_v7  ;;  %1940 = vmatmul.f32.vlgmr.msra.gmra.mxu3 %v1838_v39  ;;  %1907 = vmatpush.msra.mxu2 %v1874_v1  ;;  %v2483_v39 = vand.u32 4294901760, %v2482_v35 }
 0x55f   :  { %2068 = vmatpush.msrb.mxu3 %v2067_v54  ;;  %1967 = vmatpush.msrb.mxu0 %v1869_v7  ;;  %v1876_v11 = vsub.f32 %v1874_v1, %v1875_v8  ;;  %v2417_v22 = vpop.permute.xlu1 %2416  ;;  %v2424_v7 = vsel %vm31_vm0, %v2668_v5, 0 }
 0x560   :  { %v1871_v0 = vand.u32 4294901760, %v1870_v47  ;;  %1910 = vmatmul.f32.vlgmr.msra.gmra.mxu2 %v1837_v40  ;;  %v2208_v4 = vpop.permute.xlu0 %2207  ;;  %v3076_v28 = vand.u32 4294901760, %v2417_v22  ;;  %v2272_v40 = vand.u32 4294901760, %v2271_v32  ;;  %v2484_v52 = vsub.f32 %v2482_v35, %v2483_v39 }
 0x561   :  { %2029 = vmatpush.msrb.mxu2 %v3026_v38  ;;  %2074 = vmatpush.msrb.mxu3 %v2073_v10  ;;  %v1877_v2 = vand.u32 4294901760, %v1876_v11  ;;  %v3063_v20 = vand.u32 4294901760, %v2208_v4 }
 0x562   :  { %1971 = vmatpush.msrb.mxu0 %v1875_v8  ;;  %1872 = vmatpush.msra.mxu1 %v1871_v0  ;;  %v2476_v33 = vsub.f32 %v2417_v22, %v3076_v28 }
 0x563   :  { %2192 = vmatpush.msra.mxu3 %v3026_v38  ;;  %2031 = vmatpush.msrb.mxu2 %v3032_v42  ;;  %v2275_v23 = vsub.f32 %v2208_v4, %v3063_v20 }
 0x564   :  { %2100 = vmatpush.msra.mxu0 %v2064_v46  ;;  %1878 = vmatpush.msra.mxu1 %v1877_v2  ;;  %v2477_v41 = vand.u32 4294901760, %v2476_v33 }
 0x565   :  { %2163 = vmatpush.msra.mxu2 %v2065_v53  ;;  %2194 = vmatpush.msra.mxu3 %v3032_v42  ;;  %v2276_v29 = vand.u32 4294901760, %v2275_v23  ;;  %v2666_v53 = vld [vmem:[%s3146_s1 + $0xa8] sm:$0xff] }
 0x566   :  { %2103 = vmatpush.msra.mxu0 %v2070_v49  ;;  %1880 = vmatmul.f32.vlgmr.msra.gmra.mxu1 %v3024_v37  ;;  %v2478_v46 = vsub.f32 %v2476_v33, %v2477_v41 }
 0x567   :  { %2167 = vmatpush.msra.mxu2 %v2071_v55  ;;  %1849 = vmatmul.f32.gmra.mxu0 %v1848_v16  ;;  %v2277_v34 = vsub.f32 %v2275_v23, %v2276_v29  ;;  %v2217_v55 = vsel %vm31_vm0, %v2666_v53, 0 }
 0x568   :  { %1946 = vmatmul.f32.gmra.mxu3 %v1846_v60  ;;  %1996 = vmatpush.msrb.mxu1 %v1832_v43  ;;  %v2479_v44 = vand.u32 4294901760, %v2478_v46  ;;  %v2245_v43 = vand.u32 4294901760, %v2217_v55 }
 0x569   :  { %1915 = vmatmul.f32.gmra.mxu2 %v1845_v56  ;;  %v2485_v56 = vand.u32 4294901760, %v2484_v52 }
 0x56a   :  { %1998 = vmatpush.msrb.mxu1 %v1834_v61  ;;  %v2246_v48 = vsub.f32 %v2217_v55, %v2245_v43  ;;  %v2667_v61 = vld [vmem:[%s3146_s1 + $0xb0] sm:$0xff] }
 0x56b   :  { %v2421_v58 = vsel %vm31_vm0, %v2667_v61, 0 }
 0x56c   :  { %2130 = vmatpush.msra.mxu1 %v3026_v38  ;;  %v2665_v38 = vld [vmem:[%s3146_s1 + $0xa0] sm:$0xff]  ;;  %v2247_v62 = vand.u32 4294901760, %v2246_v48  ;;  %v2444_v50 = vand.u32 4294901760, %v2421_v58 }
 0x56d   :  { %v2214_v45 = vsel %vm31_vm0, %v2665_v38, 0 }
 0x56e   :  { %2132 = vmatpush.msra.mxu1 %v3032_v42  ;;  %v2278_v42 = vand.u32 4294901760, %v2277_v34  ;;  %v3099_v49 = vand.u32 4294901760, %v2214_v45  ;;  %v2248_v1 = vsub.f32 %v2246_v48, %v2247_v62  ;;  %v2445_v60 = vsub.f32 %v2421_v58, %v2444_v50 }
 0x56f   :  { %1884 = vmatmul.f32.gmra.mxu1 %v3037_v51  ;;  %1973 = vmatmul.f32.vlgmr.msrb.gmra.mxu0 %v3024_v37 }
 0x570   :  { %2076 = vmatmul.f32.vlgmr.msrb.gmra.mxu3 %v3044_v9  ;;  %2234 = vmatpush.msrb.mxu0 %v3060_v19  ;;  %v2249_v54 = vand.u32 4294901760, %v2248_v1  ;;  %v2446_v8 = vand.u32 4294901760, %v2445_v60 }
 0x571   :  { %2335 = vmatpush.msrb.mxu3 %v3060_v19  ;;  %2037 = vmatmul.f32.vlgmr.msrb.gmra.mxu2 %v2036_v24 }
 0x572   :  { %2236 = vmatpush.msrb.mxu0 %v3063_v20  ;;  %2305 = vmatpush.msrb.mxu2 %v2269_v21  ;;  %v2447_v47 = vsub.f32 %v2445_v60, %v2446_v8 }
 0x573   :  { %2337 = vmatpush.msrb.mxu3 %v3063_v20 }
 0x574   :  { %2308 = vmatpush.msrb.mxu2 %v2275_v23  ;;  %v2448_v63 = vand.u32 4294901760, %v2447_v47 }
 0x577   :  { %1977 = vmatmul.f32.gmra.mxu0 %v3037_v51  ;;  %2000 = vmatmul.f32.vlgmr.msrb.gmra.mxu1 %v3024_v37  ;;  %v2238_v37 = vsub.f32 %v2214_v45, %v3099_v49 }
 0x578   :  { %2080 = vmatmul.f32.gmra.mxu3 %v3058_v18  ;;  %2273 = vmatpush.msrb.mxu1 %v2272_v40 }
 0x579   :  { %2045 = vmatmul.f32.gmra.mxu2 %v2044_v36  ;;  %v2239_v57 = vand.u32 4294901760, %v2238_v37 }
 0x57a   :  { %2279 = vmatpush.msrb.mxu1 %v2278_v42 }
 0x57f   :  { %2004 = vmatmul.f32.gmra.mxu1 %v3037_v51  ;;  %2106 = vmatmul.f32.vlgmr.msra.gmra.mxu0 %v3051_v13  ;;  %v2240_v51 = vsub.f32 %v2238_v37, %v2239_v57 }
 0x580   :  { %2196 = vmatmul.f32.vlgmr.msra.gmra.mxu3 %v3044_v9  ;;  %2368 = vmatpush.msra.mxu0 %v2270_v26 }
 0x581   :  { %2480 = vmatpush.msra.mxu3 %v2479_v44  ;;  %2169 = vmatmul.f32.vlgmr.msra.gmra.mxu2 %v3044_v9  ;;  %v2241_v59 = vand.u32 4294901760, %v2240_v51  ;;  %v2452_v9 = vand.u32 4294901760, %v2424_v7 }
 0x582   :  { %2372 = vmatpush.msra.mxu0 %v2276_v29  ;;  %2441 = vmatpush.msra.mxu2 %v3076_v28 }
 0x583   :  { %2486 = vmatpush.msra.mxu3 %v2485_v56  ;;  %v2453_v10 = vsub.f32 %v2424_v7, %v2452_v9 }
 0x584   :  { %2443 = vmatpush.msra.mxu2 %v3082_v30 }
 0x585   :  { %v2454_v6 = vand.u32 4294901760, %v2453_v10 }
 0x587   :  { %2111 = vmatmul.f32.gmra.mxu0 %v3069_v3  ;;  %2136 = vmatmul.f32.vlgmr.msra.gmra.mxu1 %v2034_v17  ;;  %v2455_v0 = vsub.f32 %v2453_v10, %v2454_v6 }
 0x588   :  { %2200 = vmatmul.f32.gmra.mxu3 %v3058_v18  ;;  %2397 = vmatpush.msra.mxu1 %v3060_v19 }
 0x589   :  { %2173 = vmatmul.f32.gmra.mxu2 %v3058_v18  ;;  %v2456_v11 = vand.u32 4294901760, %v2455_v0 }
 0x58a   :  { %2399 = vmatpush.msra.mxu1 %v3063_v20 }
 0x58f   :  { %2142 = vmatmul.f32.gmra.mxu1 %v2042_v25  ;;  %2242 = vmatmul.f32.vlgmr.msrb.gmra.mxu0 %v2241_v59 }
 0x590   :  { %2341 = vmatmul.f32.vlgmr.msrb.gmra.mxu3 %v2239_v57  ;;  %2512 = vmatpush.msrb.mxu0 %v2476_v33 }
 0x591   :  { %2604 = vmatpush.msrb.mxu3 %v3076_v28  ;;  %2311 = vmatmul.f32.vlgmr.msrb.gmra.mxu2 %v2238_v37 }
 0x592   :  { %2515 = vmatpush.msrb.mxu0 %v2482_v35  ;;  %2575 = vmatpush.msrb.mxu2 %v2477_v41 }
 0x593   :  { %2606 = vmatpush.msrb.mxu3 %v3082_v30 }
 0x594   :  { %2579 = vmatpush.msrb.mxu2 %v2483_v39 }
 0x597   :  { %2281 = vmatmul.f32.vlgmr.msrb.gmra.mxu1 %v3099_v49  ;;  %2250 = vmatmul.f32.gmra.mxu0 %v2249_v54 }
 0x598   :  { %2542 = vmatpush.msrb.mxu1 %v3076_v28  ;;  %2347 = vmatmul.f32.gmra.mxu3 %v2247_v62 }
 0x599   :  { %2316 = vmatmul.f32.gmra.mxu2 %v2246_v48 }
 0x59a   :  { %2544 = vmatpush.msrb.mxu1 %v3082_v30 }
 0x59f   :  { %2285 = vmatmul.f32.gmra.mxu1 %v2245_v43  ;;  %2374 = vmatmul.f32.vlgmr.msra.gmra.mxu0 %v3099_v49 }
 0x5a0   :  { %2488 = vmatmul.f32.vlgmr.msra.gmra.mxu3 %v2444_v50 }
 0x5a1   :  { %2449 = vmatmul.f32.vlgmr.msra.gmra.mxu2 %v2448_v63 }
 0x5a7   :  { %2401 = vmatmul.f32.vlgmr.msra.gmra.mxu1 %v3099_v49  ;;  %2378 = vmatmul.f32.gmra.mxu0 %v2245_v43 }
 0x5a8   :  { %2492 = vmatmul.f32.gmra.mxu3 %v2452_v9 }
 0x5a9   :  { %2457 = vmatmul.f32.gmra.mxu2 %v2456_v11 }
 0x5af   :  { %2405 = vmatmul.f32.gmra.mxu1 %v2245_v43  ;;  %2518 = vmatmul.f32.vlgmr.msrb.gmra.mxu0 %v2445_v60 }
 0x5b0   :  { %2608 = vmatmul.f32.vlgmr.msrb.gmra.mxu3 %v2444_v50 }
 0x5b1   :  { %2581 = vmatmul.f32.vlgmr.msrb.gmra.mxu2 %v2444_v50 }
 0x5b7   :  { %2548 = vmatmul.f32.vlgmr.msrb.gmra.mxu1 %v2446_v8  ;;  %2523 = vmatmul.f32.gmra.mxu0 %v2453_v10 }
 0x5b8   :  { %2612 = vmatmul.f32.gmra.mxu3 %v2452_v9 }
 0x5b9   :  { %2585 = vmatmul.f32.gmra.mxu2 %v2452_v9 }
 0x5bf   :  { %2554 = vmatmul.f32.gmra.mxu1 %v2454_v6 }
 0x5da   :  { %v1842_v13 = vpop.f32.mrf.mxu0 }
 0x5e1   :  { %v1941_v14 = vpop.f32.mrf.mxu3 }
 0x5e3   :  { %v1911_v15 = vpop.f32.mrf.mxu2  ;;  %v1881_v16 = vpop.f32.mrf.mxu1 }
 0x5e4   :  { %v1850_v2 = vpop.f32.mrf.mxu0  ;;  %v1882_v40 = vadd.f32 %v1881_v16, %v1842_v13 }
 0x5e6   :  { %v1912_v41 = vadd.f32 %v1911_v15, %v1882_v40 }
 0x5e8   :  { %v1942_v49 = vadd.f32 %v1941_v14, %v1912_v41 }
 0x5eb   :  { %v1947_v4 = vpop.f32.mrf.mxu3 }
 0x5ec   :  { %v1885_v17 = vpop.f32.mrf.mxu1  ;;  %v1974_v18 = vpop.f32.mrf.mxu0 }
 0x5ed   :  { %v1916_v19 = vpop.f32.mrf.mxu2  ;;  %v1886_v52 = vadd.f32 %v1885_v17, %v1850_v2  ;;  %v1975_v53 = vadd.f32 %v1974_v18, %v1942_v49 }
 0x5ef   :  { %v1917_v44 = vadd.f32 %v1916_v19, %v1886_v52 }
 0x5f1   :  { %v1948_v51 = vadd.f32 %v1947_v4, %v1917_v44 }
 0x5f3   :  { %v2077_v20 = vpop.f32.mrf.mxu3 }
 0x5f4   :  { %v2001_v12 = vpop.f32.mrf.mxu1  ;;  %v1978_v3 = vpop.f32.mrf.mxu0 }
 0x5f5   :  { %v2038_v21 = vpop.f32.mrf.mxu2  ;;  %v2002_v37 = vadd.f32 %v2001_v12, %v1975_v53  ;;  %v1979_v61 = vadd.f32 %v1978_v3, %v1948_v51 }
 0x5f7   :  { %v2039_v48 = vadd.f32 %v2038_v21, %v2002_v37 }
 0x5f9   :  { %v2078_v59 = vadd.f32 %v2077_v20, %v2039_v48 }
 0x5fb   :  { %v2081_v22 = vpop.f32.mrf.mxu3 }
 0x5fc   :  { %v2005_v23 = vpop.f32.mrf.mxu1  ;;  %v2107_v24 = vpop.f32.mrf.mxu0 }
 0x5fd   :  { %v2046_v25 = vpop.f32.mrf.mxu2  ;;  %v2006_v62 = vadd.f32 %v2005_v23, %v1979_v61  ;;  %v2108_v5 = vadd.f32 %v2107_v24, %v2078_v59 }
 0x5ff   :  { %v2047_v8 = vadd.f32 %v2046_v25, %v2006_v62 }
 0x601   :  { %v2082_v6 = vadd.f32 %v2081_v22, %v2047_v8 }
 0x603   :  { %v2197_v26 = vpop.f32.mrf.mxu3 }
 0x604   :  { %v2137_v27 = vpop.f32.mrf.mxu1  ;;  %v2112_v28 = vpop.f32.mrf.mxu0 }
 0x605   :  { %v2170_v29 = vpop.f32.mrf.mxu2  ;;  %v2138_v9 = vadd.f32 %v2137_v27, %v2108_v5  ;;  %v2113_v16 = vadd.f32 %v2112_v28, %v2082_v6 }
 0x607   :  { %v2171_v0 = vadd.f32 %v2170_v29, %v2138_v9 }
 0x609   :  { %v2198_v19 = vadd.f32 %v2197_v26, %v2171_v0 }
 0x60b   :  { %v3136_v30 = vpop.f32.mrf.mxu3 }
 0x60c   :  { %v2143_v31 = vpop.f32.mrf.mxu1  ;;  %v2243_v32 = vpop.f32.mrf.mxu0 }
 0x60d   :  { %v2174_v33 = vpop.f32.mrf.mxu2  ;;  %v2144_v20 = vadd.f32 %v2143_v31, %v2113_v16 }
 0x60f   :  { %v2175_v27 = vadd.f32 %v2174_v33, %v2144_v20 }
 0x611   :  { %v2202_v26 = vadd.f32 %v3136_v30, %v2175_v27 }
 0x613   :  { %v2342_v34 = vpop.f32.mrf.mxu3 }
 0x614   :  { %v2282_v35 = vpop.f32.mrf.mxu1  ;;  %v2251_v36 = vpop.f32.mrf.mxu0 }
 0x615   :  { %v2312_v38 = vpop.f32.mrf.mxu2  ;;  %v2283_v58 = vadd.f32 %v2282_v35, %v2243_v32 }
 0x617   :  { %v2313_v60 = vadd.f32 %v2312_v38, %v2283_v58 }
 0x619   :  { %v2343_v47 = vadd.f32 %v2342_v34, %v2313_v60  ;;  %v2621_v34 = vpop.permute.xlu0 %2620 }
 0x61b   :  { %v2348_v42 = vpop.f32.mrf.mxu3 }
 0x61c   :  { %v2286_v45 = vpop.f32.mrf.mxu1  ;;  %v2375_v39 = vpop.f32.mrf.mxu0 }
 0x61d   :  { %v2317_v46 = vpop.f32.mrf.mxu2  ;;  %v2287_v10 = vadd.f32 %v2286_v45, %v2251_v36  ;;  %v2376_v11 = vadd.f32 %v2375_v39, %v2343_v47 }
 0x61f   :  { %v2318_v2 = vadd.f32 %v2317_v46, %v2287_v10  ;;  %v2626_v46 = vpop.permute.xlu1 %2625 }
 0x621   :  { %v2349_v21 = vadd.f32 %v2348_v42, %v2318_v2 }
 0x623   :  { %v2489_v55 = vpop.f32.mrf.mxu3 }
 0x624   :  { %v2402_v56 = vpop.f32.mrf.mxu1  ;;  %v2379_v57 = vpop.f32.mrf.mxu0 }
 0x625   :  { %v2450_v43 = vpop.f32.mrf.mxu2  ;;  %v2403_v4 = vadd.f32 %v2402_v56, %v2376_v11  ;;  %v2380_v22 = vadd.f32 %v2379_v57, %v2349_v21 }
 0x626   :  { %v2490_v63 = vadd.f32 %v2489_v55, %v2450_v43 }
 0x627   :  { %v2409_v23 = vadd.f32 %v2403_v4, %v2198_v19 }
 0x62b   :  { %v2493_v1 = vpop.f32.mrf.mxu3 }
 0x62c   :  { %v2406_v50 = vpop.f32.mrf.mxu1  ;;  %v2519_v54 = vpop.f32.mrf.mxu0 }
 0x62d   :  { %v2458_v7 = vpop.f32.mrf.mxu2  ;;  %v2520_v13 = vadd.f32 %v2519_v54, %v2490_v63  ;;  %v2407_v36 = vadd.f32 %v2406_v50, %v2380_v22 }
 0x62e   :  { %v2494_v24 = vadd.f32 %v2493_v1, %v2458_v7 }
 0x62f   :  { %v2410_v42 = vadd.f32 %v2407_v36, %v2202_v26 }
 0x633   :  { %v2609_v15 = vpop.f32.mrf.mxu3 }
 0x634   :  { %v2549_v14 = vpop.f32.mrf.mxu1  ;;  %v2524_v3 = vpop.f32.mrf.mxu0 }
 0x635   :  { %v2550_v17 = vadd.f32 %v2549_v14, %v2520_v13  ;;  %v2582_v18 = vpop.f32.mrf.mxu2  ;;  %v2525_v32 = vadd.f32 %v2524_v3, %v2494_v24 }
 0x637   :  { %v2583_v12 = vadd.f32 %v2582_v18, %v2550_v17 }
 0x639   :  { %v2610_v25 = vadd.f32 %v2609_v15, %v2583_v12 }
 0x63b   :  { %v2616_v29 = vadd.f32 %v2610_v25, %v2409_v23  ;;  %v2613_v41 = vpop.f32.mrf.mxu3 }
 0x63c   :  { %v2555_v35 = vpop.f32.mrf.mxu1 }
 0x63d   :  { %v2628_v28 = vadd.f32 %v2621_v34, %v2616_v29  ;;  %v2556_v38 = vadd.f32 %v2555_v35, %v2525_v32  ;;  %v2586_v40 = vpop.f32.mrf.mxu2 }
 0x63f   :  { %v2630_v31 = vmax.f32 %v2628_v28, 0.0  ;;  %v2587_v45 = vadd.f32 %v2586_v40, %v2556_v38 }
 0x641   :  { %2633 = vst.msk [vmem:[%s3148_s3] sm:$0xff] %vm2632_vm9, %v2630_v31  ;;  %v2614_v33 = vadd.f32 %v2613_v41, %v2587_v45 }
 0x643   :  { %v2617_v39 = vadd.f32 %v2614_v33, %v2410_v42 }
 0x645   :  { %v2629_v49 = vadd.f32 %v2626_v46, %v2617_v39 }
 0x647   :  { %v2631_v52 = vmax.f32 %v2629_v49, 0.0 }
 0x649   :  { %2634 = vst.msk [vmem:[%s3148_s3 + $0x8] sm:$0xff] %vm2632_vm9, %v2631_v52 }

</bundles_post_ra>
